<compile_context>
chip_gen: v7x
topology: tpu7x:2x2x1
jax: 0.10.0
libtpu: 0.0.40
codegen_flags: <defaults>
</compile_context>

<pallas_src>
import jax
import jax.numpy as jnp
from jax.experimental import pallas as pl
from jax.experimental.pallas import tpu as pltpu

# --------------------------------------------------------------------------
# Module-consistent configuration (args.*)
# --------------------------------------------------------------------------
B = 2          # batch
P = 16         # args.seq_len
M = 8          # args.n_features
HID_C = 16     # args.hidCNN
HID_R = 16     # args.hidRNN
HID_S = 8      # args.hidSkip
CK = 4         # args.CNN_kernel
SKIP = 4       # args.skip
HW = 4         # args.day_range
T = P - CK + 1               # conv output length (13)
PT = (P - CK) // SKIP        # self.pt (3)
OFF = T - PT * SKIP          # first time index used by the skip GRU (1)
NV = B * P - CK + 1          # rows of the batch-major conv output (29)
# args.output_fun == 'sigmoid'

# --------------------------------------------------------------------------
# Single weight slab layout: every weight stacked vertically at lane 0 in one
# [SLAB_ROWS, 128] f32 buffer -> one DMA, static .at-style slices in-kernel.
# --------------------------------------------------------------------------
_SLAB_ENTRIES = [
    ('cw',      (CK * M, HID_C)),        # conv taps, row dk*M+dm
    ('cb',      (1, HID_C)),
    ('wi1',     (HID_C, 3 * HID_R)),     # GRU1 W_ih^T, gates packed r|z|n
    ('wh1',     (HID_R, 3 * HID_R)),     # GRU1 W_hh^T
    ('bi1',     (1, 3 * HID_R)),         # [b_ir+b_hr | b_iz+b_hz | b_in]
    ('bhn1',    (1, HID_R)),             # b_hn
    ('wis',     (HID_C, 3 * HID_S)),     # skip GRU W_ih^T
    ('whs',     (HID_S, 3 * HID_S)),     # skip GRU W_hh^T
    ('bis',     (1, 3 * HID_S)),
    ('bhns',    (1, HID_S)),
    ('w1r',     (HID_R, M)),             # linear1, r block
    ('w1s_cat', (HID_S, SKIP * M)),      # linear1 skip blocks, lane-concat
    ('dmask',   (B * SKIP, SKIP * M)),   # diag mask for the skip head
    ('fold',    (B, B * SKIP)),          # per-batch row-fold matrix
    ('ahw',     (B, B * P)),             # highway as a selection matmul
    ('bout',    (1, M)),                 # lin1_b + hw_b
]
_SLAB_OFF = {}
_row = 0
for _name, _shp in _SLAB_ENTRIES:
    _SLAB_OFF[_name] = (_row, _shp)
    _row += _shp[0]
SLAB_ROWS = ((_row + 7) // 8) * 8
SLAB_COLS = 128


# --------------------------------------------------------------------------
# Fused kernel: conv+ReLU -> GRU1 -> skip GRU -> linear1 + highway + sigmoid
# --------------------------------------------------------------------------
def _lstnet_kernel(x_ref, w_ref, o_ref):
    f32 = jnp.float32

    def wld(name):
        # Static slice of the weight slab, read right where it is needed
        # (bounds weight live ranges -> no vreg spills on the unrolled chain).
        r0, (nr, nc) = _SLAB_OFF[name]
        return w_ref[r0:r0 + nr, 0:nc]

    xf = x_ref[...]                                   # [B*P, M] = [32, 8]

    # ---- conv1 + ReLU: both batches in one [NV, M] operand per tap ---------
    # c2 row b*P+t is valid for t < T; the few trailing rows per batch are
    # finite garbage that is never selected downstream.
    cw = wld('cw')                                    # [CK*M, HID_C]
    acc = jnp.dot(xf[0:NV, :], cw[0:M, :], preferred_element_type=f32)
    for dk in range(1, CK):
        acc = acc + jnp.dot(xf[dk:dk + NV, :], cw[dk * M:(dk + 1) * M, :],
                            preferred_element_type=f32)
    c2 = jnp.maximum(acc + wld('cb'), 0.0)            # [NV, HID_C]  (dropout=id)

    # ---- GRU1: gate-packed, batched over B ---------------------------------
    gi = jnp.dot(c2, wld('wi1'), preferred_element_type=f32) + wld('bi1')  # [NV, 48]
    wh1 = wld('wh1')                                  # [16, 48]
    bhn1 = wld('bhn1')                                # [1, 16]
    mask2 = jax.lax.broadcasted_iota(jnp.int32, (B, 3 * HID_R), 0) == 0
    h = jnp.zeros((B, HID_R), f32)
    for t in range(T):                                # fully unrolled recurrence
        # batch-0 row from slice A (row 0), batch-1 row from slice B (row 1);
        # select is off the h-dependency chain (depends only on gi).
        g_in = jnp.where(mask2, gi[t:t + B, :], gi[P - 1 + t:P + 1 + t, :])   # [2,48]
        gh = jnp.dot(h, wh1, preferred_element_type=f32)                      # [2,48]
        rz = jax.nn.sigmoid(g_in[:, :2 * HID_R] + gh[:, :2 * HID_R])          # 1 EUP pass
        r = rz[:, :HID_R]
        z = rz[:, HID_R:2 * HID_R]
        n = jnp.tanh(g_in[:, 2 * HID_R:] + r * (gh[:, 2 * HID_R:] + bhn1))    # 1 EUP pass
        h = (1.0 - z) * n + z * h                     # [B, HID_R] == torch r

    # ---- skip GRU: SKIP phases x B batches as 8 rows of one state ----------
    si = jnp.dot(c2, wld('wis'), preferred_element_type=f32) + wld('bis')  # [NV, 24]
    whs = wld('whs')                                  # [8, 24]
    bhns = wld('bhns')                                # [1, 8]
    mask8 = jax.lax.broadcasted_iota(jnp.int32, (B * SKIP, 3 * HID_S), 0) < SKIP
    hs = jnp.zeros((B * SKIP, HID_S), f32)
    for sp in range(PT):                              # fully unrolled
        a0 = OFF + sp * SKIP
        # rows 0..3 <- batch 0 times a0..a0+3, rows 4..7 <- batch 1 same times
        s_in = jnp.where(mask8,
                         si[a0:a0 + B * SKIP, :],
                         si[P + a0 - SKIP:P + a0 + SKIP, :])                  # [8,24]
        sh = jnp.dot(hs, whs, preferred_element_type=f32)                     # [8,24]
        rz = jax.nn.sigmoid(s_in[:, :2 * HID_S] + sh[:, :2 * HID_S])
        rr = rz[:, :HID_S]
        zz = rz[:, HID_S:2 * HID_S]
        cand = jnp.tanh(s_in[:, 2 * HID_S:] + rr * (sh[:, 2 * HID_S:] + bhns))
        hs = (1.0 - zz) * cand + zz * hs              # row b*SKIP+j == torch s

    # ---- head: linear1 (r + skip blocks) + highway + sigmoid, one store ----
    res = jnp.dot(h, wld('w1r'), preferred_element_type=f32)                  # [B, M]
    # skip part: one matmul against the lane-concat of the 4 per-phase blocks,
    # then keep only each row's own phase block (diag mask), fold lanes, and
    # fold the 4 phase rows per batch with one tiny matmul.
    u = jnp.dot(hs, wld('w1s_cat'), preferred_element_type=f32) * wld('dmask')  # [8,32]
    vf = u[:, 0:M] + u[:, M:2 * M] + u[:, 2 * M:3 * M] + u[:, 3 * M:4 * M]      # [8, M]
    res = res + jnp.dot(wld('fold'), vf, preferred_element_type=f32)            # [B, M]
    # highway: precomputed [B, B*P] selection weights -> one matmul
    res = res + jnp.dot(wld('ahw'), xf, preferred_element_type=f32)
    o_ref[...] = jax.nn.sigmoid(res + wld('bout'))


def lstnet_forward(x, w_slab):
    """x: [B, P, M] float32; w_slab: [SLAB_ROWS, 128] from prepare_params."""
    xf = x.reshape(B * P, M)                          # free (contiguous) reshape
    vmem = pl.BlockSpec(memory_space=pltpu.MemorySpace.VMEM)
    return pl.pallas_call(
        _lstnet_kernel,
        out_shape=jax.ShapeDtypeStruct((B, M), jnp.float32),
        in_specs=[vmem, vmem],
        out_specs=vmem,
        compiler_params=pltpu.CompilerParams(vmem_limit_bytes=16 * 1024 * 1024),
        cost_estimate=pl.CostEstimate(flops=160_000, transcendentals=2_000,
                                      bytes_accessed=72_000),
    )(xf, w_slab)


# --------------------------------------------------------------------------
# One-time weight re-layout (PyTorch layout -> single kernel slab)
# --------------------------------------------------------------------------
def prepare_params(p):
    H, Hs = HID_R, HID_S
    bih, bhh = p['gru1_b_ih'], p['gru1_b_hh']
    sbih, sbhh = p['grus_b_ih'], p['grus_b_hh']

    pieces = {
        'cw': jnp.transpose(p['conv_w'][:, 0, :, :], (1, 2, 0)).reshape(CK * M, HID_C),
        'cb': p['conv_b'].reshape(1, HID_C),
        'wi1': p['gru1_w_ih'].T,                                        # [16, 48] r|z|n
        'wh1': p['gru1_w_hh'].T,                                        # [16, 48]
        'bi1': jnp.concatenate([bih[:2 * H] + bhh[:2 * H], bih[2 * H:]]).reshape(1, 3 * H),
        'bhn1': bhh[2 * H:].reshape(1, H),
        'wis': p['grus_w_ih'].T,                                        # [16, 24]
        'whs': p['grus_w_hh'].T,                                        # [8, 24]
        'bis': jnp.concatenate([sbih[:2 * Hs] + sbhh[:2 * Hs], sbih[2 * Hs:]]).reshape(1, 3 * Hs),
        'bhns': sbhh[2 * Hs:].reshape(1, Hs),
        'w1r': p['lin1_w'][:, :H].T,                                    # [16, 8]
        'w1s_cat': jnp.concatenate(
            [p['lin1_w'][:, H + j * Hs:H + (j + 1) * Hs].T for j in range(SKIP)], axis=1),
        'dmask': (jnp.arange(SKIP * M)[None, :] // M
                  == jnp.arange(B * SKIP)[:, None] % SKIP).astype(jnp.float32),
        'fold': (jnp.arange(B * SKIP)[None, :] // SKIP
                 == jnp.arange(B)[:, None]).astype(jnp.float32),
        'bout': (p['lin1_b'] + p['hw_b'][0]).reshape(1, M),
    }
    ahw = jnp.zeros((B, B * P), jnp.float32)
    for b in range(B):
        for k in range(HW):
            ahw = ahw.at[b, b * P + P - HW + k].set(p['hw_w'][0, k])
    pieces['ahw'] = ahw

    slab = jnp.zeros((SLAB_ROWS, SLAB_COLS), jnp.float32)
    for name, arr in pieces.items():
        r0, (nr, nc) = _SLAB_OFF[name]
        assert arr.shape == (nr, nc), (name, arr.shape, (nr, nc))
        slab = slab.at[r0:r0 + nr, 0:nc].set(arr.astype(jnp.float32))
    return slab


# --------------------------------------------------------------------------
# Deterministic parameter init (shapes follow the PyTorch module)
# --------------------------------------------------------------------------
def init_params(key):
    ks = jax.random.split(key, 12)

    def nrm(k, shape, scale=0.1):
        return scale * jax.random.normal(k, shape, dtype=jnp.float32)

    return {
        'conv_w': nrm(ks[0], (HID_C, 1, CK, M)),
        'conv_b': nrm(ks[1], (HID_C,)),
        'gru1_w_ih': nrm(ks[2], (3 * HID_R, HID_C)),
        'gru1_w_hh': nrm(ks[3], (3 * HID_R, HID_R)),
        'gru1_b_ih': nrm(ks[4], (3 * HID_R,)),
        'gru1_b_hh': nrm(ks[5], (3 * HID_R,)),
        'grus_w_ih': nrm(ks[6], (3 * HID_S, HID_C)),
        'grus_w_hh': nrm(ks[7], (3 * HID_S, HID_S)),
        'grus_b_ih': nrm(ks[8], (3 * HID_S,)),
        'grus_b_hh': nrm(ks[9], (3 * HID_S,)),
        'lin1_w': nrm(ks[10], (M, HID_R + SKIP * HID_S)),
        'lin1_b': jnp.zeros((M,), jnp.float32),
        'hw_w': nrm(ks[11], (1, HW)),
        'hw_b': jnp.zeros((1,), jnp.float32),
    }


# --------------------------------------------------------------------------
# Pure-JAX reference mirroring the PyTorch module (for correctness check)
# --------------------------------------------------------------------------
def lstnet_reference(x, p):
    Bn = x.shape[0]
    w = p['conv_w'][:, 0]                                       # [hidC, Ck, m]
    c = jnp.stack([jnp.einsum('bkm,okm->bo', x[:, t:t + CK, :], w)
                   for t in range(T)], axis=-1)                 # [B, hidC, T]
    c = jax.nn.relu(c + p['conv_b'][None, :, None])

    def gru(seq, w_ih, w_hh, b_ih, b_hh, H):
        def cell(h, xt):
            gi = xt @ w_ih.T + b_ih
            gh = h @ w_hh.T + b_hh
            r = jax.nn.sigmoid(gi[:, :H] + gh[:, :H])
            z = jax.nn.sigmoid(gi[:, H:2 * H] + gh[:, H:2 * H])
            n = jnp.tanh(gi[:, 2 * H:] + r * gh[:, 2 * H:])
            return (1.0 - z) * n + z * h, None
        h0 = jnp.zeros((seq.shape[1], H), jnp.float32)
        h, _ = jax.lax.scan(cell, h0, seq)
        return h

    r = gru(jnp.transpose(c, (2, 0, 1)), p['gru1_w_ih'], p['gru1_w_hh'],
            p['gru1_b_ih'], p['gru1_b_hh'], HID_R)              # [B, hidR]
    s = c[:, :, -PT * SKIP:].reshape(Bn, HID_C, PT, SKIP)
    s = jnp.transpose(s, (2, 0, 3, 1)).reshape(PT, Bn * SKIP, HID_C)
    s = gru(s, p['grus_w_ih'], p['grus_w_hh'],
            p['grus_b_ih'], p['grus_b_hh'], HID_S).reshape(Bn, SKIP * HID_S)
    rc = jnp.concatenate([r, s], axis=1)
    res = rc @ p['lin1_w'].T + p['lin1_b']
    z = jnp.transpose(x[:, -HW:, :], (0, 2, 1)).reshape(-1, HW)
    z = (z @ p['hw_w'].T + p['hw_b']).reshape(-1, M)
    return jax.nn.sigmoid(res + z)


if __name__ == "__main__":
    key = jax.random.PRNGKey(0)
    pkey, xkey = jax.random.split(key)
    params = init_params(pkey)
    w_slab = prepare_params(params)                  # one-time weight re-layout
    x = jax.random.normal(xkey, (B, P, M), dtype=jnp.float32)

    out = jax.jit(lstnet_forward)(x, w_slab)
    jax.block_until_ready(out)
    assert out.shape == (B, M) and out.dtype == jnp.float32

    ref = lstnet_reference(x, params)
    err = float(jnp.max(jnp.abs(out - ref)))
    assert err < 5e-4, f"kernel/reference mismatch: {err}"
    print("KERNEL_OK")
</pallas_src>

<mosaic_0001>
module attributes {stable_mosaic.version = 11 : i64} {
  func.func @_lstnet_kernel(%arg0: memref<32x8xf32, #tpu.memory_space<vmem>>, %arg1: memref<136x128xf32, #tpu.memory_space<vmem>>, %arg2: memref<2x8xf32, #tpu.memory_space<vmem>>) attributes {dimension_semantics = [], scalar_prefetch = 0 : i64, scratch_operands = 0 : i64, tpu.core_type = #tpu.core_type<tc>} {
    %c0 = arith.constant 0 : index
    %c0_0 = arith.constant 0 : index
    %0 = vector.load %arg0[%c0, %c0_0] : memref<32x8xf32, #tpu.memory_space<vmem>>, vector<32x8xf32>
    %c0_1 = arith.constant 0 : index
    %c0_2 = arith.constant 0 : index
    %1 = vector.load %arg1[%c0_1, %c0_2] : memref<136x128xf32, #tpu.memory_space<vmem>>, vector<32x16xf32>
    %2 = vector.extract_strided_slice %0 {offsets = [0, 0], sizes = [29, 8], strides = [1, 1]} : vector<32x8xf32> to vector<29x8xf32>
    %3 = vector.extract_strided_slice %1 {offsets = [0, 0], sizes = [8, 16], strides = [1, 1]} : vector<32x16xf32> to vector<8x16xf32>
    %cst = arith.constant dense<0.000000e+00> : vector<29x16xf32>
    %4 = tpu.matmul %2, %3, %cst {dimension_numbers = #tpu.dot_dimension_numbers<[1], [0], [0], [1], [0, 0, 1, 1], [], []>} : vector<29x8xf32>, vector<8x16xf32>, vector<29x16xf32> -> vector<29x16xf32>
    %5 = vector.extract_strided_slice %0 {offsets = [1, 0], sizes = [29, 8], strides = [1, 1]} : vector<32x8xf32> to vector<29x8xf32>
    %6 = vector.extract_strided_slice %1 {offsets = [8, 0], sizes = [8, 16], strides = [1, 1]} : vector<32x16xf32> to vector<8x16xf32>
    %cst_3 = arith.constant dense<0.000000e+00> : vector<29x16xf32>
    %7 = tpu.matmul %5, %6, %cst_3 {dimension_numbers = #tpu.dot_dimension_numbers<[1], [0], [0], [1], [0, 0, 1, 1], [], []>} : vector<29x8xf32>, vector<8x16xf32>, vector<29x16xf32> -> vector<29x16xf32>
    %8 = arith.addf %4, %7 : vector<29x16xf32>
    %9 = vector.extract_strided_slice %0 {offsets = [2, 0], sizes = [29, 8], strides = [1, 1]} : vector<32x8xf32> to vector<29x8xf32>
    %10 = vector.extract_strided_slice %1 {offsets = [16, 0], sizes = [8, 16], strides = [1, 1]} : vector<32x16xf32> to vector<8x16xf32>
    %cst_4 = arith.constant dense<0.000000e+00> : vector<29x16xf32>
    %11 = tpu.matmul %9, %10, %cst_4 {dimension_numbers = #tpu.dot_dimension_numbers<[1], [0], [0], [1], [0, 0, 1, 1], [], []>} : vector<29x8xf32>, vector<8x16xf32>, vector<29x16xf32> -> vector<29x16xf32>
    %12 = arith.addf %8, %11 : vector<29x16xf32>
    %13 = vector.extract_strided_slice %0 {offsets = [3, 0], sizes = [29, 8], strides = [1, 1]} : vector<32x8xf32> to vector<29x8xf32>
    %14 = vector.extract_strided_slice %1 {offsets = [24, 0], sizes = [8, 16], strides = [1, 1]} : vector<32x16xf32> to vector<8x16xf32>
    %cst_5 = arith.constant dense<0.000000e+00> : vector<29x16xf32>
    %15 = tpu.matmul %13, %14, %cst_5 {dimension_numbers = #tpu.dot_dimension_numbers<[1], [0], [0], [1], [0, 0, 1, 1], [], []>} : vector<29x8xf32>, vector<8x16xf32>, vector<29x16xf32> -> vector<29x16xf32>
    %16 = arith.addf %12, %15 : vector<29x16xf32>
    %c32 = arith.constant 32 : index
    %c0_6 = arith.constant 0 : index
    %17 = vector.load %arg1[%c32, %c0_6] : memref<136x128xf32, #tpu.memory_space<vmem>>, vector<1x16xf32>
    %18 = vector.broadcast %17 : vector<1x16xf32> to vector<29x16xf32>
    %19 = arith.addf %16, %18 : vector<29x16xf32>
    %cst_7 = arith.constant 0.000000e+00 : f32
    %20 = vector.broadcast %cst_7 : f32 to vector<29x16xf32>
    %21 = arith.maximumf %19, %20 : vector<29x16xf32>
    %c33 = arith.constant 33 : index
    %c0_8 = arith.constant 0 : index
    %22 = vector.load %arg1[%c33, %c0_8] : memref<136x128xf32, #tpu.memory_space<vmem>>, vector<16x48xf32>
    %cst_9 = arith.constant dense<0.000000e+00> : vector<29x48xf32>
    %23 = tpu.matmul %21, %22, %cst_9 {dimension_numbers = #tpu.dot_dimension_numbers<[1], [0], [0], [1], [0, 0, 1, 1], [], []>} : vector<29x16xf32>, vector<16x48xf32>, vector<29x48xf32> -> vector<29x48xf32>
    %c65 = arith.constant 65 : index
    %c0_10 = arith.constant 0 : index
    %24 = vector.load %arg1[%c65, %c0_10] : memref<136x128xf32, #tpu.memory_space<vmem>>, vector<1x48xf32>
    %25 = vector.broadcast %24 : vector<1x48xf32> to vector<29x48xf32>
    %26 = arith.addf %23, %25 : vector<29x48xf32>
    %c49 = arith.constant 49 : index
    %c0_11 = arith.constant 0 : index
    %27 = vector.load %arg1[%c49, %c0_11] : memref<136x128xf32, #tpu.memory_space<vmem>>, vector<16x48xf32>
    %c66 = arith.constant 66 : index
    %c0_12 = arith.constant 0 : index
    %28 = vector.load %arg1[%c66, %c0_12] : memref<136x128xf32, #tpu.memory_space<vmem>>, vector<1x16xf32>
    %29 = tpu.iota {dimensions = array<i32: 0>} : vector<2x48xi32>
    %c0_i32 = arith.constant 0 : i32
    %30 = vector.broadcast %c0_i32 : i32 to vector<2x48xi32>
    %31 = arith.cmpi eq, %29, %30 : vector<2x48xi32>
    %cst_13 = arith.constant 0.000000e+00 : f32
    %32 = vector.broadcast %cst_13 : f32 to vector<2x16xf32>
    %33 = vector.extract_strided_slice %26 {offsets = [0, 0], sizes = [2, 48], strides = [1, 1]} : vector<29x48xf32> to vector<2x48xf32>
    %34 = vector.extract_strided_slice %26 {offsets = [15, 0], sizes = [2, 48], strides = [1, 1]} : vector<29x48xf32> to vector<2x48xf32>
    %35 = arith.select %31, %33, %34 : vector<2x48xi1>, vector<2x48xf32>
    %cst_14 = arith.constant dense<0.000000e+00> : vector<2x48xf32>
    %36 = tpu.matmul %32, %27, %cst_14 {dimension_numbers = #tpu.dot_dimension_numbers<[1], [0], [0], [1], [0, 0, 1, 1], [], []>} : vector<2x16xf32>, vector<16x48xf32>, vector<2x48xf32> -> vector<2x48xf32>
    %37 = vector.extract_strided_slice %35 {offsets = [0, 0], sizes = [2, 32], strides = [1, 1]} : vector<2x48xf32> to vector<2x32xf32>
    %38 = vector.extract_strided_slice %36 {offsets = [0, 0], sizes = [2, 32], strides = [1, 1]} : vector<2x48xf32> to vector<2x32xf32>
    %39 = arith.addf %37, %38 : vector<2x32xf32>
    %40 = arith.negf %39 : vector<2x32xf32>
    %41 = math.exp %40 : vector<2x32xf32>
    %cst_15 = arith.constant 1.000000e+00 : f32
    %42 = vector.broadcast %cst_15 : f32 to vector<2x32xf32>
    %43 = arith.addf %42, %41 : vector<2x32xf32>
    %44 = arith.divf %42, %43 : vector<2x32xf32>
    %45 = vector.extract_strided_slice %44 {offsets = [0, 0], sizes = [2, 16], strides = [1, 1]} : vector<2x32xf32> to vector<2x16xf32>
    %46 = vector.extract_strided_slice %44 {offsets = [0, 16], sizes = [2, 16], strides = [1, 1]} : vector<2x32xf32> to vector<2x16xf32>
    %47 = vector.extract_strided_slice %35 {offsets = [0, 32], sizes = [2, 16], strides = [1, 1]} : vector<2x48xf32> to vector<2x16xf32>
    %48 = vector.extract_strided_slice %36 {offsets = [0, 32], sizes = [2, 16], strides = [1, 1]} : vector<2x48xf32> to vector<2x16xf32>
    %49 = vector.broadcast %28 : vector<1x16xf32> to vector<2x16xf32>
    %50 = arith.addf %48, %49 : vector<2x16xf32>
    %51 = arith.mulf %45, %50 : vector<2x16xf32>
    %52 = arith.addf %47, %51 : vector<2x16xf32>
    %53 = math.tanh %52 : vector<2x16xf32>
    %cst_16 = arith.constant 1.000000e+00 : f32
    %54 = vector.broadcast %cst_16 : f32 to vector<2x16xf32>
    %55 = arith.subf %54, %46 : vector<2x16xf32>
    %56 = arith.mulf %55, %53 : vector<2x16xf32>
    %57 = arith.mulf %46, %32 : vector<2x16xf32>
    %58 = arith.addf %56, %57 : vector<2x16xf32>
    %59 = vector.extract_strided_slice %26 {offsets = [1, 0], sizes = [2, 48], strides = [1, 1]} : vector<29x48xf32> to vector<2x48xf32>
    %60 = vector.extract_strided_slice %26 {offsets = [16, 0], sizes = [2, 48], strides = [1, 1]} : vector<29x48xf32> to vector<2x48xf32>
    %61 = arith.select %31, %59, %60 : vector<2x48xi1>, vector<2x48xf32>
    %cst_17 = arith.constant dense<0.000000e+00> : vector<2x48xf32>
    %62 = tpu.matmul %58, %27, %cst_17 {dimension_numbers = #tpu.dot_dimension_numbers<[1], [0], [0], [1], [0, 0, 1, 1], [], []>} : vector<2x16xf32>, vector<16x48xf32>, vector<2x48xf32> -> vector<2x48xf32>
    %63 = vector.extract_strided_slice %61 {offsets = [0, 0], sizes = [2, 32], strides = [1, 1]} : vector<2x48xf32> to vector<2x32xf32>
    %64 = vector.extract_strided_slice %62 {offsets = [0, 0], sizes = [2, 32], strides = [1, 1]} : vector<2x48xf32> to vector<2x32xf32>
    %65 = arith.addf %63, %64 : vector<2x32xf32>
    %66 = arith.negf %65 : vector<2x32xf32>
    %67 = math.exp %66 : vector<2x32xf32>
    %cst_18 = arith.constant 1.000000e+00 : f32
    %68 = vector.broadcast %cst_18 : f32 to vector<2x32xf32>
    %69 = arith.addf %68, %67 : vector<2x32xf32>
    %70 = arith.divf %68, %69 : vector<2x32xf32>
    %71 = vector.extract_strided_slice %70 {offsets = [0, 0], sizes = [2, 16], strides = [1, 1]} : vector<2x32xf32> to vector<2x16xf32>
    %72 = vector.extract_strided_slice %70 {offsets = [0, 16], sizes = [2, 16], strides = [1, 1]} : vector<2x32xf32> to vector<2x16xf32>
    %73 = vector.extract_strided_slice %61 {offsets = [0, 32], sizes = [2, 16], strides = [1, 1]} : vector<2x48xf32> to vector<2x16xf32>
    %74 = vector.extract_strided_slice %62 {offsets = [0, 32], sizes = [2, 16], strides = [1, 1]} : vector<2x48xf32> to vector<2x16xf32>
    %75 = vector.broadcast %28 : vector<1x16xf32> to vector<2x16xf32>
    %76 = arith.addf %74, %75 : vector<2x16xf32>
    %77 = arith.mulf %71, %76 : vector<2x16xf32>
    %78 = arith.addf %73, %77 : vector<2x16xf32>
    %79 = math.tanh %78 : vector<2x16xf32>
    %cst_19 = arith.constant 1.000000e+00 : f32
    %80 = vector.broadcast %cst_19 : f32 to vector<2x16xf32>
    %81 = arith.subf %80, %72 : vector<2x16xf32>
    %82 = arith.mulf %81, %79 : vector<2x16xf32>
    %83 = arith.mulf %72, %58 : vector<2x16xf32>
    %84 = arith.addf %82, %83 : vector<2x16xf32>
    %85 = vector.extract_strided_slice %26 {offsets = [2, 0], sizes = [2, 48], strides = [1, 1]} : vector<29x48xf32> to vector<2x48xf32>
    %86 = vector.extract_strided_slice %26 {offsets = [17, 0], sizes = [2, 48], strides = [1, 1]} : vector<29x48xf32> to vector<2x48xf32>
    %87 = arith.select %31, %85, %86 : vector<2x48xi1>, vector<2x48xf32>
    %cst_20 = arith.constant dense<0.000000e+00> : vector<2x48xf32>
    %88 = tpu.matmul %84, %27, %cst_20 {dimension_numbers = #tpu.dot_dimension_numbers<[1], [0], [0], [1], [0, 0, 1, 1], [], []>} : vector<2x16xf32>, vector<16x48xf32>, vector<2x48xf32> -> vector<2x48xf32>
    %89 = vector.extract_strided_slice %87 {offsets = [0, 0], sizes = [2, 32], strides = [1, 1]} : vector<2x48xf32> to vector<2x32xf32>
    %90 = vector.extract_strided_slice %88 {offsets = [0, 0], sizes = [2, 32], strides = [1, 1]} : vector<2x48xf32> to vector<2x32xf32>
    %91 = arith.addf %89, %90 : vector<2x32xf32>
    %92 = arith.negf %91 : vector<2x32xf32>
    %93 = math.exp %92 : vector<2x32xf32>
    %cst_21 = arith.constant 1.000000e+00 : f32
    %94 = vector.broadcast %cst_21 : f32 to vector<2x32xf32>
    %95 = arith.addf %94, %93 : vector<2x32xf32>
    %96 = arith.divf %94, %95 : vector<2x32xf32>
    %97 = vector.extract_strided_slice %96 {offsets = [0, 0], sizes = [2, 16], strides = [1, 1]} : vector<2x32xf32> to vector<2x16xf32>
    %98 = vector.extract_strided_slice %96 {offsets = [0, 16], sizes = [2, 16], strides = [1, 1]} : vector<2x32xf32> to vector<2x16xf32>
    %99 = vector.extract_strided_slice %87 {offsets = [0, 32], sizes = [2, 16], strides = [1, 1]} : vector<2x48xf32> to vector<2x16xf32>
    %100 = vector.extract_strided_slice %88 {offsets = [0, 32], sizes = [2, 16], strides = [1, 1]} : vector<2x48xf32> to vector<2x16xf32>
    %101 = vector.broadcast %28 : vector<1x16xf32> to vector<2x16xf32>
    %102 = arith.addf %100, %101 : vector<2x16xf32>
    %103 = arith.mulf %97, %102 : vector<2x16xf32>
    %104 = arith.addf %99, %103 : vector<2x16xf32>
    %105 = math.tanh %104 : vector<2x16xf32>
    %cst_22 = arith.constant 1.000000e+00 : f32
    %106 = vector.broadcast %cst_22 : f32 to vector<2x16xf32>
    %107 = arith.subf %106, %98 : vector<2x16xf32>
    %108 = arith.mulf %107, %105 : vector<2x16xf32>
    %109 = arith.mulf %98, %84 : vector<2x16xf32>
    %110 = arith.addf %108, %109 : vector<2x16xf32>
    %111 = vector.extract_strided_slice %26 {offsets = [3, 0], sizes = [2, 48], strides = [1, 1]} : vector<29x48xf32> to vector<2x48xf32>
    %112 = vector.extract_strided_slice %26 {offsets = [18, 0], sizes = [2, 48], strides = [1, 1]} : vector<29x48xf32> to vector<2x48xf32>
    %113 = arith.select %31, %111, %112 : vector<2x48xi1>, vector<2x48xf32>
    %cst_23 = arith.constant dense<0.000000e+00> : vector<2x48xf32>
    %114 = tpu.matmul %110, %27, %cst_23 {dimension_numbers = #tpu.dot_dimension_numbers<[1], [0], [0], [1], [0, 0, 1, 1], [], []>} : vector<2x16xf32>, vector<16x48xf32>, vector<2x48xf32> -> vector<2x48xf32>
    %115 = vector.extract_strided_slice %113 {offsets = [0, 0], sizes = [2, 32], strides = [1, 1]} : vector<2x48xf32> to vector<2x32xf32>
    %116 = vector.extract_strided_slice %114 {offsets = [0, 0], sizes = [2, 32], strides = [1, 1]} : vector<2x48xf32> to vector<2x32xf32>
    %117 = arith.addf %115, %116 : vector<2x32xf32>
    %118 = arith.negf %117 : vector<2x32xf32>
    %119 = math.exp %118 : vector<2x32xf32>
    %cst_24 = arith.constant 1.000000e+00 : f32
    %120 = vector.broadcast %cst_24 : f32 to vector<2x32xf32>
    %121 = arith.addf %120, %119 : vector<2x32xf32>
    %122 = arith.divf %120, %121 : vector<2x32xf32>
    %123 = vector.extract_strided_slice %122 {offsets = [0, 0], sizes = [2, 16], strides = [1, 1]} : vector<2x32xf32> to vector<2x16xf32>
    %124 = vector.extract_strided_slice %122 {offsets = [0, 16], sizes = [2, 16], strides = [1, 1]} : vector<2x32xf32> to vector<2x16xf32>
    %125 = vector.extract_strided_slice %113 {offsets = [0, 32], sizes = [2, 16], strides = [1, 1]} : vector<2x48xf32> to vector<2x16xf32>
    %126 = vector.extract_strided_slice %114 {offsets = [0, 32], sizes = [2, 16], strides = [1, 1]} : vector<2x48xf32> to vector<2x16xf32>
    %127 = vector.broadcast %28 : vector<1x16xf32> to vector<2x16xf32>
    %128 = arith.addf %126, %127 : vector<2x16xf32>
    %129 = arith.mulf %123, %128 : vector<2x16xf32>
    %130 = arith.addf %125, %129 : vector<2x16xf32>
    %131 = math.tanh %130 : vector<2x16xf32>
    %cst_25 = arith.constant 1.000000e+00 : f32
    %132 = vector.broadcast %cst_25 : f32 to vector<2x16xf32>
    %133 = arith.subf %132, %124 : vector<2x16xf32>
    %134 = arith.mulf %133, %131 : vector<2x16xf32>
    %135 = arith.mulf %124, %110 : vector<2x16xf32>
    %136 = arith.addf %134, %135 : vector<2x16xf32>
    %137 = vector.extract_strided_slice %26 {offsets = [4, 0], sizes = [2, 48], strides = [1, 1]} : vector<29x48xf32> to vector<2x48xf32>
    %138 = vector.extract_strided_slice %26 {offsets = [19, 0], sizes = [2, 48], strides = [1, 1]} : vector<29x48xf32> to vector<2x48xf32>
    %139 = arith.select %31, %137, %138 : vector<2x48xi1>, vector<2x48xf32>
    %cst_26 = arith.constant dense<0.000000e+00> : vector<2x48xf32>
    %140 = tpu.matmul %136, %27, %cst_26 {dimension_numbers = #tpu.dot_dimension_numbers<[1], [0], [0], [1], [0, 0, 1, 1], [], []>} : vector<2x16xf32>, vector<16x48xf32>, vector<2x48xf32> -> vector<2x48xf32>
    %141 = vector.extract_strided_slice %139 {offsets = [0, 0], sizes = [2, 32], strides = [1, 1]} : vector<2x48xf32> to vector<2x32xf32>
    %142 = vector.extract_strided_slice %140 {offsets = [0, 0], sizes = [2, 32], strides = [1, 1]} : vector<2x48xf32> to vector<2x32xf32>
    %143 = arith.addf %141, %142 : vector<2x32xf32>
    %144 = arith.negf %143 : vector<2x32xf32>
    %145 = math.exp %144 : vector<2x32xf32>
    %cst_27 = arith.constant 1.000000e+00 : f32
    %146 = vector.broadcast %cst_27 : f32 to vector<2x32xf32>
    %147 = arith.addf %146, %145 : vector<2x32xf32>
    %148 = arith.divf %146, %147 : vector<2x32xf32>
    %149 = vector.extract_strided_slice %148 {offsets = [0, 0], sizes = [2, 16], strides = [1, 1]} : vector<2x32xf32> to vector<2x16xf32>
    %150 = vector.extract_strided_slice %148 {offsets = [0, 16], sizes = [2, 16], strides = [1, 1]} : vector<2x32xf32> to vector<2x16xf32>
    %151 = vector.extract_strided_slice %139 {offsets = [0, 32], sizes = [2, 16], strides = [1, 1]} : vector<2x48xf32> to vector<2x16xf32>
    %152 = vector.extract_strided_slice %140 {offsets = [0, 32], sizes = [2, 16], strides = [1, 1]} : vector<2x48xf32> to vector<2x16xf32>
    %153 = vector.broadcast %28 : vector<1x16xf32> to vector<2x16xf32>
    %154 = arith.addf %152, %153 : vector<2x16xf32>
    %155 = arith.mulf %149, %154 : vector<2x16xf32>
    %156 = arith.addf %151, %155 : vector<2x16xf32>
    %157 = math.tanh %156 : vector<2x16xf32>
    %cst_28 = arith.constant 1.000000e+00 : f32
    %158 = vector.broadcast %cst_28 : f32 to vector<2x16xf32>
    %159 = arith.subf %158, %150 : vector<2x16xf32>
    %160 = arith.mulf %159, %157 : vector<2x16xf32>
    %161 = arith.mulf %150, %136 : vector<2x16xf32>
    %162 = arith.addf %160, %161 : vector<2x16xf32>
    %163 = vector.extract_strided_slice %26 {offsets = [5, 0], sizes = [2, 48], strides = [1, 1]} : vector<29x48xf32> to vector<2x48xf32>
    %164 = vector.extract_strided_slice %26 {offsets = [20, 0], sizes = [2, 48], strides = [1, 1]} : vector<29x48xf32> to vector<2x48xf32>
    %165 = arith.select %31, %163, %164 : vector<2x48xi1>, vector<2x48xf32>
    %cst_29 = arith.constant dense<0.000000e+00> : vector<2x48xf32>
    %166 = tpu.matmul %162, %27, %cst_29 {dimension_numbers = #tpu.dot_dimension_numbers<[1], [0], [0], [1], [0, 0, 1, 1], [], []>} : vector<2x16xf32>, vector<16x48xf32>, vector<2x48xf32> -> vector<2x48xf32>
    %167 = vector.extract_strided_slice %165 {offsets = [0, 0], sizes = [2, 32], strides = [1, 1]} : vector<2x48xf32> to vector<2x32xf32>
    %168 = vector.extract_strided_slice %166 {offsets = [0, 0], sizes = [2, 32], strides = [1, 1]} : vector<2x48xf32> to vector<2x32xf32>
    %169 = arith.addf %167, %168 : vector<2x32xf32>
    %170 = arith.negf %169 : vector<2x32xf32>
    %171 = math.exp %170 : vector<2x32xf32>
    %cst_30 = arith.constant 1.000000e+00 : f32
    %172 = vector.broadcast %cst_30 : f32 to vector<2x32xf32>
    %173 = arith.addf %172, %171 : vector<2x32xf32>
    %174 = arith.divf %172, %173 : vector<2x32xf32>
    %175 = vector.extract_strided_slice %174 {offsets = [0, 0], sizes = [2, 16], strides = [1, 1]} : vector<2x32xf32> to vector<2x16xf32>
    %176 = vector.extract_strided_slice %174 {offsets = [0, 16], sizes = [2, 16], strides = [1, 1]} : vector<2x32xf32> to vector<2x16xf32>
    %177 = vector.extract_strided_slice %165 {offsets = [0, 32], sizes = [2, 16], strides = [1, 1]} : vector<2x48xf32> to vector<2x16xf32>
    %178 = vector.extract_strided_slice %166 {offsets = [0, 32], sizes = [2, 16], strides = [1, 1]} : vector<2x48xf32> to vector<2x16xf32>
    %179 = vector.broadcast %28 : vector<1x16xf32> to vector<2x16xf32>
    %180 = arith.addf %178, %179 : vector<2x16xf32>
    %181 = arith.mulf %175, %180 : vector<2x16xf32>
    %182 = arith.addf %177, %181 : vector<2x16xf32>
    %183 = math.tanh %182 : vector<2x16xf32>
    %cst_31 = arith.constant 1.000000e+00 : f32
    %184 = vector.broadcast %cst_31 : f32 to vector<2x16xf32>
    %185 = arith.subf %184, %176 : vector<2x16xf32>
    %186 = arith.mulf %185, %183 : vector<2x16xf32>
    %187 = arith.mulf %176, %162 : vector<2x16xf32>
    %188 = arith.addf %186, %187 : vector<2x16xf32>
    %189 = vector.extract_strided_slice %26 {offsets = [6, 0], sizes = [2, 48], strides = [1, 1]} : vector<29x48xf32> to vector<2x48xf32>
    %190 = vector.extract_strided_slice %26 {offsets = [21, 0], sizes = [2, 48], strides = [1, 1]} : vector<29x48xf32> to vector<2x48xf32>
    %191 = arith.select %31, %189, %190 : vector<2x48xi1>, vector<2x48xf32>
    %cst_32 = arith.constant dense<0.000000e+00> : vector<2x48xf32>
    %192 = tpu.matmul %188, %27, %cst_32 {dimension_numbers = #tpu.dot_dimension_numbers<[1], [0], [0], [1], [0, 0, 1, 1], [], []>} : vector<2x16xf32>, vector<16x48xf32>, vector<2x48xf32> -> vector<2x48xf32>
    %193 = vector.extract_strided_slice %191 {offsets = [0, 0], sizes = [2, 32], strides = [1, 1]} : vector<2x48xf32> to vector<2x32xf32>
    %194 = vector.extract_strided_slice %192 {offsets = [0, 0], sizes = [2, 32], strides = [1, 1]} : vector<2x48xf32> to vector<2x32xf32>
    %195 = arith.addf %193, %194 : vector<2x32xf32>
    %196 = arith.negf %195 : vector<2x32xf32>
    %197 = math.exp %196 : vector<2x32xf32>
    %cst_33 = arith.constant 1.000000e+00 : f32
    %198 = vector.broadcast %cst_33 : f32 to vector<2x32xf32>
    %199 = arith.addf %198, %197 : vector<2x32xf32>
    %200 = arith.divf %198, %199 : vector<2x32xf32>
    %201 = vector.extract_strided_slice %200 {offsets = [0, 0], sizes = [2, 16], strides = [1, 1]} : vector<2x32xf32> to vector<2x16xf32>
    %202 = vector.extract_strided_slice %200 {offsets = [0, 16], sizes = [2, 16], strides = [1, 1]} : vector<2x32xf32> to vector<2x16xf32>
    %203 = vector.extract_strided_slice %191 {offsets = [0, 32], sizes = [2, 16], strides = [1, 1]} : vector<2x48xf32> to vector<2x16xf32>
    %204 = vector.extract_strided_slice %192 {offsets = [0, 32], sizes = [2, 16], strides = [1, 1]} : vector<2x48xf32> to vector<2x16xf32>
    %205 = vector.broadcast %28 : vector<1x16xf32> to vector<2x16xf32>
    %206 = arith.addf %204, %205 : vector<2x16xf32>
    %207 = arith.mulf %201, %206 : vector<2x16xf32>
    %208 = arith.addf %203, %207 : vector<2x16xf32>
    %209 = math.tanh %208 : vector<2x16xf32>
    %cst_34 = arith.constant 1.000000e+00 : f32
    %210 = vector.broadcast %cst_34 : f32 to vector<2x16xf32>
    %211 = arith.subf %210, %202 : vector<2x16xf32>
    %212 = arith.mulf %211, %209 : vector<2x16xf32>
    %213 = arith.mulf %202, %188 : vector<2x16xf32>
    %214 = arith.addf %212, %213 : vector<2x16xf32>
    %215 = vector.extract_strided_slice %26 {offsets = [7, 0], sizes = [2, 48], strides = [1, 1]} : vector<29x48xf32> to vector<2x48xf32>
    %216 = vector.extract_strided_slice %26 {offsets = [22, 0], sizes = [2, 48], strides = [1, 1]} : vector<29x48xf32> to vector<2x48xf32>
    %217 = arith.select %31, %215, %216 : vector<2x48xi1>, vector<2x48xf32>
    %cst_35 = arith.constant dense<0.000000e+00> : vector<2x48xf32>
    %218 = tpu.matmul %214, %27, %cst_35 {dimension_numbers = #tpu.dot_dimension_numbers<[1], [0], [0], [1], [0, 0, 1, 1], [], []>} : vector<2x16xf32>, vector<16x48xf32>, vector<2x48xf32> -> vector<2x48xf32>
    %219 = vector.extract_strided_slice %217 {offsets = [0, 0], sizes = [2, 32], strides = [1, 1]} : vector<2x48xf32> to vector<2x32xf32>
    %220 = vector.extract_strided_slice %218 {offsets = [0, 0], sizes = [2, 32], strides = [1, 1]} : vector<2x48xf32> to vector<2x32xf32>
    %221 = arith.addf %219, %220 : vector<2x32xf32>
    %222 = arith.negf %221 : vector<2x32xf32>
    %223 = math.exp %222 : vector<2x32xf32>
    %cst_36 = arith.constant 1.000000e+00 : f32
    %224 = vector.broadcast %cst_36 : f32 to vector<2x32xf32>
    %225 = arith.addf %224, %223 : vector<2x32xf32>
    %226 = arith.divf %224, %225 : vector<2x32xf32>
    %227 = vector.extract_strided_slice %226 {offsets = [0, 0], sizes = [2, 16], strides = [1, 1]} : vector<2x32xf32> to vector<2x16xf32>
    %228 = vector.extract_strided_slice %226 {offsets = [0, 16], sizes = [2, 16], strides = [1, 1]} : vector<2x32xf32> to vector<2x16xf32>
    %229 = vector.extract_strided_slice %217 {offsets = [0, 32], sizes = [2, 16], strides = [1, 1]} : vector<2x48xf32> to vector<2x16xf32>
    %230 = vector.extract_strided_slice %218 {offsets = [0, 32], sizes = [2, 16], strides = [1, 1]} : vector<2x48xf32> to vector<2x16xf32>
    %231 = vector.broadcast %28 : vector<1x16xf32> to vector<2x16xf32>
    %232 = arith.addf %230, %231 : vector<2x16xf32>
    %233 = arith.mulf %227, %232 : vector<2x16xf32>
    %234 = arith.addf %229, %233 : vector<2x16xf32>
    %235 = math.tanh %234 : vector<2x16xf32>
    %cst_37 = arith.constant 1.000000e+00 : f32
    %236 = vector.broadcast %cst_37 : f32 to vector<2x16xf32>
    %237 = arith.subf %236, %228 : vector<2x16xf32>
    %238 = arith.mulf %237, %235 : vector<2x16xf32>
    %239 = arith.mulf %228, %214 : vector<2x16xf32>
    %240 = arith.addf %238, %239 : vector<2x16xf32>
    %241 = vector.extract_strided_slice %26 {offsets = [8, 0], sizes = [2, 48], strides = [1, 1]} : vector<29x48xf32> to vector<2x48xf32>
    %242 = vector.extract_strided_slice %26 {offsets = [23, 0], sizes = [2, 48], strides = [1, 1]} : vector<29x48xf32> to vector<2x48xf32>
    %243 = arith.select %31, %241, %242 : vector<2x48xi1>, vector<2x48xf32>
    %cst_38 = arith.constant dense<0.000000e+00> : vector<2x48xf32>
    %244 = tpu.matmul %240, %27, %cst_38 {dimension_numbers = #tpu.dot_dimension_numbers<[1], [0], [0], [1], [0, 0, 1, 1], [], []>} : vector<2x16xf32>, vector<16x48xf32>, vector<2x48xf32> -> vector<2x48xf32>
    %245 = vector.extract_strided_slice %243 {offsets = [0, 0], sizes = [2, 32], strides = [1, 1]} : vector<2x48xf32> to vector<2x32xf32>
    %246 = vector.extract_strided_slice %244 {offsets = [0, 0], sizes = [2, 32], strides = [1, 1]} : vector<2x48xf32> to vector<2x32xf32>
    %247 = arith.addf %245, %246 : vector<2x32xf32>
    %248 = arith.negf %247 : vector<2x32xf32>
    %249 = math.exp %248 : vector<2x32xf32>
    %cst_39 = arith.constant 1.000000e+00 : f32
    %250 = vector.broadcast %cst_39 : f32 to vector<2x32xf32>
    %251 = arith.addf %250, %249 : vector<2x32xf32>
    %252 = arith.divf %250, %251 : vector<2x32xf32>
    %253 = vector.extract_strided_slice %252 {offsets = [0, 0], sizes = [2, 16], strides = [1, 1]} : vector<2x32xf32> to vector<2x16xf32>
    %254 = vector.extract_strided_slice %252 {offsets = [0, 16], sizes = [2, 16], strides = [1, 1]} : vector<2x32xf32> to vector<2x16xf32>
    %255 = vector.extract_strided_slice %243 {offsets = [0, 32], sizes = [2, 16], strides = [1, 1]} : vector<2x48xf32> to vector<2x16xf32>
    %256 = vector.extract_strided_slice %244 {offsets = [0, 32], sizes = [2, 16], strides = [1, 1]} : vector<2x48xf32> to vector<2x16xf32>
    %257 = vector.broadcast %28 : vector<1x16xf32> to vector<2x16xf32>
    %258 = arith.addf %256, %257 : vector<2x16xf32>
    %259 = arith.mulf %253, %258 : vector<2x16xf32>
    %260 = arith.addf %255, %259 : vector<2x16xf32>
    %261 = math.tanh %260 : vector<2x16xf32>
    %cst_40 = arith.constant 1.000000e+00 : f32
    %262 = vector.broadcast %cst_40 : f32 to vector<2x16xf32>
    %263 = arith.subf %262, %254 : vector<2x16xf32>
    %264 = arith.mulf %263, %261 : vector<2x16xf32>
    %265 = arith.mulf %254, %240 : vector<2x16xf32>
    %266 = arith.addf %264, %265 : vector<2x16xf32>
    %267 = vector.extract_strided_slice %26 {offsets = [9, 0], sizes = [2, 48], strides = [1, 1]} : vector<29x48xf32> to vector<2x48xf32>
    %268 = vector.extract_strided_slice %26 {offsets = [24, 0], sizes = [2, 48], strides = [1, 1]} : vector<29x48xf32> to vector<2x48xf32>
    %269 = arith.select %31, %267, %268 : vector<2x48xi1>, vector<2x48xf32>
    %cst_41 = arith.constant dense<0.000000e+00> : vector<2x48xf32>
    %270 = tpu.matmul %266, %27, %cst_41 {dimension_numbers = #tpu.dot_dimension_numbers<[1], [0], [0], [1], [0, 0, 1, 1], [], []>} : vector<2x16xf32>, vector<16x48xf32>, vector<2x48xf32> -> vector<2x48xf32>
    %271 = vector.extract_strided_slice %269 {offsets = [0, 0], sizes = [2, 32], strides = [1, 1]} : vector<2x48xf32> to vector<2x32xf32>
    %272 = vector.extract_strided_slice %270 {offsets = [0, 0], sizes = [2, 32], strides = [1, 1]} : vector<2x48xf32> to vector<2x32xf32>
    %273 = arith.addf %271, %272 : vector<2x32xf32>
    %274 = arith.negf %273 : vector<2x32xf32>
    %275 = math.exp %274 : vector<2x32xf32>
    %cst_42 = arith.constant 1.000000e+00 : f32
    %276 = vector.broadcast %cst_42 : f32 to vector<2x32xf32>
    %277 = arith.addf %276, %275 : vector<2x32xf32>
    %278 = arith.divf %276, %277 : vector<2x32xf32>
    %279 = vector.extract_strided_slice %278 {offsets = [0, 0], sizes = [2, 16], strides = [1, 1]} : vector<2x32xf32> to vector<2x16xf32>
    %280 = vector.extract_strided_slice %278 {offsets = [0, 16], sizes = [2, 16], strides = [1, 1]} : vector<2x32xf32> to vector<2x16xf32>
    %281 = vector.extract_strided_slice %269 {offsets = [0, 32], sizes = [2, 16], strides = [1, 1]} : vector<2x48xf32> to vector<2x16xf32>
    %282 = vector.extract_strided_slice %270 {offsets = [0, 32], sizes = [2, 16], strides = [1, 1]} : vector<2x48xf32> to vector<2x16xf32>
    %283 = vector.broadcast %28 : vector<1x16xf32> to vector<2x16xf32>
    %284 = arith.addf %282, %283 : vector<2x16xf32>
    %285 = arith.mulf %279, %284 : vector<2x16xf32>
    %286 = arith.addf %281, %285 : vector<2x16xf32>
    %287 = math.tanh %286 : vector<2x16xf32>
    %cst_43 = arith.constant 1.000000e+00 : f32
    %288 = vector.broadcast %cst_43 : f32 to vector<2x16xf32>
    %289 = arith.subf %288, %280 : vector<2x16xf32>
    %290 = arith.mulf %289, %287 : vector<2x16xf32>
    %291 = arith.mulf %280, %266 : vector<2x16xf32>
    %292 = arith.addf %290, %291 : vector<2x16xf32>
    %293 = vector.extract_strided_slice %26 {offsets = [10, 0], sizes = [2, 48], strides = [1, 1]} : vector<29x48xf32> to vector<2x48xf32>
    %294 = vector.extract_strided_slice %26 {offsets = [25, 0], sizes = [2, 48], strides = [1, 1]} : vector<29x48xf32> to vector<2x48xf32>
    %295 = arith.select %31, %293, %294 : vector<2x48xi1>, vector<2x48xf32>
    %cst_44 = arith.constant dense<0.000000e+00> : vector<2x48xf32>
    %296 = tpu.matmul %292, %27, %cst_44 {dimension_numbers = #tpu.dot_dimension_numbers<[1], [0], [0], [1], [0, 0, 1, 1], [], []>} : vector<2x16xf32>, vector<16x48xf32>, vector<2x48xf32> -> vector<2x48xf32>
    %297 = vector.extract_strided_slice %295 {offsets = [0, 0], sizes = [2, 32], strides = [1, 1]} : vector<2x48xf32> to vector<2x32xf32>
    %298 = vector.extract_strided_slice %296 {offsets = [0, 0], sizes = [2, 32], strides = [1, 1]} : vector<2x48xf32> to vector<2x32xf32>
    %299 = arith.addf %297, %298 : vector<2x32xf32>
    %300 = arith.negf %299 : vector<2x32xf32>
    %301 = math.exp %300 : vector<2x32xf32>
    %cst_45 = arith.constant 1.000000e+00 : f32
    %302 = vector.broadcast %cst_45 : f32 to vector<2x32xf32>
    %303 = arith.addf %302, %301 : vector<2x32xf32>
    %304 = arith.divf %302, %303 : vector<2x32xf32>
    %305 = vector.extract_strided_slice %304 {offsets = [0, 0], sizes = [2, 16], strides = [1, 1]} : vector<2x32xf32> to vector<2x16xf32>
    %306 = vector.extract_strided_slice %304 {offsets = [0, 16], sizes = [2, 16], strides = [1, 1]} : vector<2x32xf32> to vector<2x16xf32>
    %307 = vector.extract_strided_slice %295 {offsets = [0, 32], sizes = [2, 16], strides = [1, 1]} : vector<2x48xf32> to vector<2x16xf32>
    %308 = vector.extract_strided_slice %296 {offsets = [0, 32], sizes = [2, 16], strides = [1, 1]} : vector<2x48xf32> to vector<2x16xf32>
    %309 = vector.broadcast %28 : vector<1x16xf32> to vector<2x16xf32>
    %310 = arith.addf %308, %309 : vector<2x16xf32>
    %311 = arith.mulf %305, %310 : vector<2x16xf32>
    %312 = arith.addf %307, %311 : vector<2x16xf32>
    %313 = math.tanh %312 : vector<2x16xf32>
    %cst_46 = arith.constant 1.000000e+00 : f32
    %314 = vector.broadcast %cst_46 : f32 to vector<2x16xf32>
    %315 = arith.subf %314, %306 : vector<2x16xf32>
    %316 = arith.mulf %315, %313 : vector<2x16xf32>
    %317 = arith.mulf %306, %292 : vector<2x16xf32>
    %318 = arith.addf %316, %317 : vector<2x16xf32>
    %319 = vector.extract_strided_slice %26 {offsets = [11, 0], sizes = [2, 48], strides = [1, 1]} : vector<29x48xf32> to vector<2x48xf32>
    %320 = vector.extract_strided_slice %26 {offsets = [26, 0], sizes = [2, 48], strides = [1, 1]} : vector<29x48xf32> to vector<2x48xf32>
    %321 = arith.select %31, %319, %320 : vector<2x48xi1>, vector<2x48xf32>
    %cst_47 = arith.constant dense<0.000000e+00> : vector<2x48xf32>
    %322 = tpu.matmul %318, %27, %cst_47 {dimension_numbers = #tpu.dot_dimension_numbers<[1], [0], [0], [1], [0, 0, 1, 1], [], []>} : vector<2x16xf32>, vector<16x48xf32>, vector<2x48xf32> -> vector<2x48xf32>
    %323 = vector.extract_strided_slice %321 {offsets = [0, 0], sizes = [2, 32], strides = [1, 1]} : vector<2x48xf32> to vector<2x32xf32>
    %324 = vector.extract_strided_slice %322 {offsets = [0, 0], sizes = [2, 32], strides = [1, 1]} : vector<2x48xf32> to vector<2x32xf32>
    %325 = arith.addf %323, %324 : vector<2x32xf32>
    %326 = arith.negf %325 : vector<2x32xf32>
    %327 = math.exp %326 : vector<2x32xf32>
    %cst_48 = arith.constant 1.000000e+00 : f32
    %328 = vector.broadcast %cst_48 : f32 to vector<2x32xf32>
    %329 = arith.addf %328, %327 : vector<2x32xf32>
    %330 = arith.divf %328, %329 : vector<2x32xf32>
    %331 = vector.extract_strided_slice %330 {offsets = [0, 0], sizes = [2, 16], strides = [1, 1]} : vector<2x32xf32> to vector<2x16xf32>
    %332 = vector.extract_strided_slice %330 {offsets = [0, 16], sizes = [2, 16], strides = [1, 1]} : vector<2x32xf32> to vector<2x16xf32>
    %333 = vector.extract_strided_slice %321 {offsets = [0, 32], sizes = [2, 16], strides = [1, 1]} : vector<2x48xf32> to vector<2x16xf32>
    %334 = vector.extract_strided_slice %322 {offsets = [0, 32], sizes = [2, 16], strides = [1, 1]} : vector<2x48xf32> to vector<2x16xf32>
    %335 = vector.broadcast %28 : vector<1x16xf32> to vector<2x16xf32>
    %336 = arith.addf %334, %335 : vector<2x16xf32>
    %337 = arith.mulf %331, %336 : vector<2x16xf32>
    %338 = arith.addf %333, %337 : vector<2x16xf32>
    %339 = math.tanh %338 : vector<2x16xf32>
    %cst_49 = arith.constant 1.000000e+00 : f32
    %340 = vector.broadcast %cst_49 : f32 to vector<2x16xf32>
    %341 = arith.subf %340, %332 : vector<2x16xf32>
    %342 = arith.mulf %341, %339 : vector<2x16xf32>
    %343 = arith.mulf %332, %318 : vector<2x16xf32>
    %344 = arith.addf %342, %343 : vector<2x16xf32>
    %345 = vector.extract_strided_slice %26 {offsets = [12, 0], sizes = [2, 48], strides = [1, 1]} : vector<29x48xf32> to vector<2x48xf32>
    %346 = vector.extract_strided_slice %26 {offsets = [27, 0], sizes = [2, 48], strides = [1, 1]} : vector<29x48xf32> to vector<2x48xf32>
    %347 = arith.select %31, %345, %346 : vector<2x48xi1>, vector<2x48xf32>
    %cst_50 = arith.constant dense<0.000000e+00> : vector<2x48xf32>
    %348 = tpu.matmul %344, %27, %cst_50 {dimension_numbers = #tpu.dot_dimension_numbers<[1], [0], [0], [1], [0, 0, 1, 1], [], []>} : vector<2x16xf32>, vector<16x48xf32>, vector<2x48xf32> -> vector<2x48xf32>
    %349 = vector.extract_strided_slice %347 {offsets = [0, 0], sizes = [2, 32], strides = [1, 1]} : vector<2x48xf32> to vector<2x32xf32>
    %350 = vector.extract_strided_slice %348 {offsets = [0, 0], sizes = [2, 32], strides = [1, 1]} : vector<2x48xf32> to vector<2x32xf32>
    %351 = arith.addf %349, %350 : vector<2x32xf32>
    %352 = arith.negf %351 : vector<2x32xf32>
    %353 = math.exp %352 : vector<2x32xf32>
    %cst_51 = arith.constant 1.000000e+00 : f32
    %354 = vector.broadcast %cst_51 : f32 to vector<2x32xf32>
    %355 = arith.addf %354, %353 : vector<2x32xf32>
    %356 = arith.divf %354, %355 : vector<2x32xf32>
    %357 = vector.extract_strided_slice %356 {offsets = [0, 0], sizes = [2, 16], strides = [1, 1]} : vector<2x32xf32> to vector<2x16xf32>
    %358 = vector.extract_strided_slice %356 {offsets = [0, 16], sizes = [2, 16], strides = [1, 1]} : vector<2x32xf32> to vector<2x16xf32>
    %359 = vector.extract_strided_slice %347 {offsets = [0, 32], sizes = [2, 16], strides = [1, 1]} : vector<2x48xf32> to vector<2x16xf32>
    %360 = vector.extract_strided_slice %348 {offsets = [0, 32], sizes = [2, 16], strides = [1, 1]} : vector<2x48xf32> to vector<2x16xf32>
    %361 = vector.broadcast %28 : vector<1x16xf32> to vector<2x16xf32>
    %362 = arith.addf %360, %361 : vector<2x16xf32>
    %363 = arith.mulf %357, %362 : vector<2x16xf32>
    %364 = arith.addf %359, %363 : vector<2x16xf32>
    %365 = math.tanh %364 : vector<2x16xf32>
    %cst_52 = arith.constant 1.000000e+00 : f32
    %366 = vector.broadcast %cst_52 : f32 to vector<2x16xf32>
    %367 = arith.subf %366, %358 : vector<2x16xf32>
    %368 = arith.mulf %367, %365 : vector<2x16xf32>
    %369 = arith.mulf %358, %344 : vector<2x16xf32>
    %370 = arith.addf %368, %369 : vector<2x16xf32>
    %c67 = arith.constant 67 : index
    %c0_53 = arith.constant 0 : index
    %371 = vector.load %arg1[%c67, %c0_53] : memref<136x128xf32, #tpu.memory_space<vmem>>, vector<16x24xf32>
    %cst_54 = arith.constant dense<0.000000e+00> : vector<29x24xf32>
    %372 = tpu.matmul %21, %371, %cst_54 {dimension_numbers = #tpu.dot_dimension_numbers<[1], [0], [0], [1], [0, 0, 1, 1], [], []>} : vector<29x16xf32>, vector<16x24xf32>, vector<29x24xf32> -> vector<29x24xf32>
    %c91 = arith.constant 91 : index
    %c0_55 = arith.constant 0 : index
    %373 = vector.load %arg1[%c91, %c0_55] : memref<136x128xf32, #tpu.memory_space<vmem>>, vector<1x24xf32>
    %374 = vector.broadcast %373 : vector<1x24xf32> to vector<29x24xf32>
    %375 = arith.addf %372, %374 : vector<29x24xf32>
    %c83 = arith.constant 83 : index
    %c0_56 = arith.constant 0 : index
    %376 = vector.load %arg1[%c83, %c0_56] : memref<136x128xf32, #tpu.memory_space<vmem>>, vector<8x24xf32>
    %c92 = arith.constant 92 : index
    %c0_57 = arith.constant 0 : index
    %377 = vector.load %arg1[%c92, %c0_57] : memref<136x128xf32, #tpu.memory_space<vmem>>, vector<1x8xf32>
    %378 = tpu.iota {dimensions = array<i32: 0>} : vector<8x24xi32>
    %c4_i32 = arith.constant 4 : i32
    %379 = vector.broadcast %c4_i32 : i32 to vector<8x24xi32>
    %380 = arith.cmpi slt, %378, %379 : vector<8x24xi32>
    %cst_58 = arith.constant 0.000000e+00 : f32
    %381 = vector.broadcast %cst_58 : f32 to vector<8x8xf32>
    %382 = vector.extract_strided_slice %375 {offsets = [1, 0], sizes = [8, 24], strides = [1, 1]} : vector<29x24xf32> to vector<8x24xf32>
    %383 = vector.extract_strided_slice %375 {offsets = [13, 0], sizes = [8, 24], strides = [1, 1]} : vector<29x24xf32> to vector<8x24xf32>
    %384 = arith.select %380, %382, %383 : vector<8x24xi1>, vector<8x24xf32>
    %cst_59 = arith.constant dense<0.000000e+00> : vector<8x24xf32>
    %385 = tpu.matmul %381, %376, %cst_59 {dimension_numbers = #tpu.dot_dimension_numbers<[1], [0], [0], [1], [0, 0, 1, 1], [], []>} : vector<8x8xf32>, vector<8x24xf32>, vector<8x24xf32> -> vector<8x24xf32>
    %386 = vector.extract_strided_slice %384 {offsets = [0, 0], sizes = [8, 16], strides = [1, 1]} : vector<8x24xf32> to vector<8x16xf32>
    %387 = vector.extract_strided_slice %385 {offsets = [0, 0], sizes = [8, 16], strides = [1, 1]} : vector<8x24xf32> to vector<8x16xf32>
    %388 = arith.addf %386, %387 : vector<8x16xf32>
    %389 = arith.negf %388 : vector<8x16xf32>
    %390 = math.exp %389 : vector<8x16xf32>
    %cst_60 = arith.constant 1.000000e+00 : f32
    %391 = vector.broadcast %cst_60 : f32 to vector<8x16xf32>
    %392 = arith.addf %391, %390 : vector<8x16xf32>
    %393 = arith.divf %391, %392 : vector<8x16xf32>
    %394 = vector.extract_strided_slice %393 {offsets = [0, 0], sizes = [8, 8], strides = [1, 1]} : vector<8x16xf32> to vector<8x8xf32>
    %395 = vector.extract_strided_slice %393 {offsets = [0, 8], sizes = [8, 8], strides = [1, 1]} : vector<8x16xf32> to vector<8x8xf32>
    %396 = vector.extract_strided_slice %384 {offsets = [0, 16], sizes = [8, 8], strides = [1, 1]} : vector<8x24xf32> to vector<8x8xf32>
    %397 = vector.extract_strided_slice %385 {offsets = [0, 16], sizes = [8, 8], strides = [1, 1]} : vector<8x24xf32> to vector<8x8xf32>
    %398 = vector.broadcast %377 : vector<1x8xf32> to vector<8x8xf32>
    %399 = arith.addf %397, %398 : vector<8x8xf32>
    %400 = arith.mulf %394, %399 : vector<8x8xf32>
    %401 = arith.addf %396, %400 : vector<8x8xf32>
    %402 = math.tanh %401 : vector<8x8xf32>
    %cst_61 = arith.constant 1.000000e+00 : f32
    %403 = vector.broadcast %cst_61 : f32 to vector<8x8xf32>
    %404 = arith.subf %403, %395 : vector<8x8xf32>
    %405 = arith.mulf %404, %402 : vector<8x8xf32>
    %406 = arith.mulf %395, %381 : vector<8x8xf32>
    %407 = arith.addf %405, %406 : vector<8x8xf32>
    %408 = vector.extract_strided_slice %375 {offsets = [5, 0], sizes = [8, 24], strides = [1, 1]} : vector<29x24xf32> to vector<8x24xf32>
    %409 = vector.extract_strided_slice %375 {offsets = [17, 0], sizes = [8, 24], strides = [1, 1]} : vector<29x24xf32> to vector<8x24xf32>
    %410 = arith.select %380, %408, %409 : vector<8x24xi1>, vector<8x24xf32>
    %cst_62 = arith.constant dense<0.000000e+00> : vector<8x24xf32>
    %411 = tpu.matmul %407, %376, %cst_62 {dimension_numbers = #tpu.dot_dimension_numbers<[1], [0], [0], [1], [0, 0, 1, 1], [], []>} : vector<8x8xf32>, vector<8x24xf32>, vector<8x24xf32> -> vector<8x24xf32>
    %412 = vector.extract_strided_slice %410 {offsets = [0, 0], sizes = [8, 16], strides = [1, 1]} : vector<8x24xf32> to vector<8x16xf32>
    %413 = vector.extract_strided_slice %411 {offsets = [0, 0], sizes = [8, 16], strides = [1, 1]} : vector<8x24xf32> to vector<8x16xf32>
    %414 = arith.addf %412, %413 : vector<8x16xf32>
    %415 = arith.negf %414 : vector<8x16xf32>
    %416 = math.exp %415 : vector<8x16xf32>
    %cst_63 = arith.constant 1.000000e+00 : f32
    %417 = vector.broadcast %cst_63 : f32 to vector<8x16xf32>
    %418 = arith.addf %417, %416 : vector<8x16xf32>
    %419 = arith.divf %417, %418 : vector<8x16xf32>
    %420 = vector.extract_strided_slice %419 {offsets = [0, 0], sizes = [8, 8], strides = [1, 1]} : vector<8x16xf32> to vector<8x8xf32>
    %421 = vector.extract_strided_slice %419 {offsets = [0, 8], sizes = [8, 8], strides = [1, 1]} : vector<8x16xf32> to vector<8x8xf32>
    %422 = vector.extract_strided_slice %410 {offsets = [0, 16], sizes = [8, 8], strides = [1, 1]} : vector<8x24xf32> to vector<8x8xf32>
    %423 = vector.extract_strided_slice %411 {offsets = [0, 16], sizes = [8, 8], strides = [1, 1]} : vector<8x24xf32> to vector<8x8xf32>
    %424 = vector.broadcast %377 : vector<1x8xf32> to vector<8x8xf32>
    %425 = arith.addf %423, %424 : vector<8x8xf32>
    %426 = arith.mulf %420, %425 : vector<8x8xf32>
    %427 = arith.addf %422, %426 : vector<8x8xf32>
    %428 = math.tanh %427 : vector<8x8xf32>
    %cst_64 = arith.constant 1.000000e+00 : f32
    %429 = vector.broadcast %cst_64 : f32 to vector<8x8xf32>
    %430 = arith.subf %429, %421 : vector<8x8xf32>
    %431 = arith.mulf %430, %428 : vector<8x8xf32>
    %432 = arith.mulf %421, %407 : vector<8x8xf32>
    %433 = arith.addf %431, %432 : vector<8x8xf32>
    %434 = vector.extract_strided_slice %375 {offsets = [9, 0], sizes = [8, 24], strides = [1, 1]} : vector<29x24xf32> to vector<8x24xf32>
    %435 = vector.extract_strided_slice %375 {offsets = [21, 0], sizes = [8, 24], strides = [1, 1]} : vector<29x24xf32> to vector<8x24xf32>
    %436 = arith.select %380, %434, %435 : vector<8x24xi1>, vector<8x24xf32>
    %cst_65 = arith.constant dense<0.000000e+00> : vector<8x24xf32>
    %437 = tpu.matmul %433, %376, %cst_65 {dimension_numbers = #tpu.dot_dimension_numbers<[1], [0], [0], [1], [0, 0, 1, 1], [], []>} : vector<8x8xf32>, vector<8x24xf32>, vector<8x24xf32> -> vector<8x24xf32>
    %438 = vector.extract_strided_slice %436 {offsets = [0, 0], sizes = [8, 16], strides = [1, 1]} : vector<8x24xf32> to vector<8x16xf32>
    %439 = vector.extract_strided_slice %437 {offsets = [0, 0], sizes = [8, 16], strides = [1, 1]} : vector<8x24xf32> to vector<8x16xf32>
    %440 = arith.addf %438, %439 : vector<8x16xf32>
    %441 = arith.negf %440 : vector<8x16xf32>
    %442 = math.exp %441 : vector<8x16xf32>
    %cst_66 = arith.constant 1.000000e+00 : f32
    %443 = vector.broadcast %cst_66 : f32 to vector<8x16xf32>
    %444 = arith.addf %443, %442 : vector<8x16xf32>
    %445 = arith.divf %443, %444 : vector<8x16xf32>
    %446 = vector.extract_strided_slice %445 {offsets = [0, 0], sizes = [8, 8], strides = [1, 1]} : vector<8x16xf32> to vector<8x8xf32>
    %447 = vector.extract_strided_slice %445 {offsets = [0, 8], sizes = [8, 8], strides = [1, 1]} : vector<8x16xf32> to vector<8x8xf32>
    %448 = vector.extract_strided_slice %436 {offsets = [0, 16], sizes = [8, 8], strides = [1, 1]} : vector<8x24xf32> to vector<8x8xf32>
    %449 = vector.extract_strided_slice %437 {offsets = [0, 16], sizes = [8, 8], strides = [1, 1]} : vector<8x24xf32> to vector<8x8xf32>
    %450 = vector.broadcast %377 : vector<1x8xf32> to vector<8x8xf32>
    %451 = arith.addf %449, %450 : vector<8x8xf32>
    %452 = arith.mulf %446, %451 : vector<8x8xf32>
    %453 = arith.addf %448, %452 : vector<8x8xf32>
    %454 = math.tanh %453 : vector<8x8xf32>
    %cst_67 = arith.constant 1.000000e+00 : f32
    %455 = vector.broadcast %cst_67 : f32 to vector<8x8xf32>
    %456 = arith.subf %455, %447 : vector<8x8xf32>
    %457 = arith.mulf %456, %454 : vector<8x8xf32>
    %458 = arith.mulf %447, %433 : vector<8x8xf32>
    %459 = arith.addf %457, %458 : vector<8x8xf32>
    %c93 = arith.constant 93 : index
    %c0_68 = arith.constant 0 : index
    %460 = vector.load %arg1[%c93, %c0_68] : memref<136x128xf32, #tpu.memory_space<vmem>>, vector<16x8xf32>
    %cst_69 = arith.constant dense<0.000000e+00> : vector<2x8xf32>
    %461 = tpu.matmul %370, %460, %cst_69 {dimension_numbers = #tpu.dot_dimension_numbers<[1], [0], [0], [1], [0, 0, 1, 1], [], []>} : vector<2x16xf32>, vector<16x8xf32>, vector<2x8xf32> -> vector<2x8xf32>
    %c109 = arith.constant 109 : index
    %c0_70 = arith.constant 0 : index
    %462 = vector.load %arg1[%c109, %c0_70] : memref<136x128xf32, #tpu.memory_space<vmem>>, vector<8x32xf32>
    %cst_71 = arith.constant dense<0.000000e+00> : vector<8x32xf32>
    %463 = tpu.matmul %459, %462, %cst_71 {dimension_numbers = #tpu.dot_dimension_numbers<[1], [0], [0], [1], [0, 0, 1, 1], [], []>} : vector<8x8xf32>, vector<8x32xf32>, vector<8x32xf32> -> vector<8x32xf32>
    %c117 = arith.constant 117 : index
    %c0_72 = arith.constant 0 : index
    %464 = vector.load %arg1[%c117, %c0_72] : memref<136x128xf32, #tpu.memory_space<vmem>>, vector<8x32xf32>
    %465 = arith.mulf %463, %464 : vector<8x32xf32>
    %466 = vector.extract_strided_slice %465 {offsets = [0, 0], sizes = [8, 8], strides = [1, 1]} : vector<8x32xf32> to vector<8x8xf32>
    %467 = vector.extract_strided_slice %465 {offsets = [0, 8], sizes = [8, 8], strides = [1, 1]} : vector<8x32xf32> to vector<8x8xf32>
    %468 = arith.addf %466, %467 : vector<8x8xf32>
    %469 = vector.extract_strided_slice %465 {offsets = [0, 16], sizes = [8, 8], strides = [1, 1]} : vector<8x32xf32> to vector<8x8xf32>
    %470 = arith.addf %468, %469 : vector<8x8xf32>
    %471 = vector.extract_strided_slice %465 {offsets = [0, 24], sizes = [8, 8], strides = [1, 1]} : vector<8x32xf32> to vector<8x8xf32>
    %472 = arith.addf %470, %471 : vector<8x8xf32>
    %c125 = arith.constant 125 : index
    %c0_73 = arith.constant 0 : index
    %473 = vector.load %arg1[%c125, %c0_73] : memref<136x128xf32, #tpu.memory_space<vmem>>, vector<2x8xf32>
    %cst_74 = arith.constant dense<0.000000e+00> : vector<2x8xf32>
    %474 = tpu.matmul %473, %472, %cst_74 {dimension_numbers = #tpu.dot_dimension_numbers<[1], [0], [0], [1], [0, 0, 1, 1], [], []>} : vector<2x8xf32>, vector<8x8xf32>, vector<2x8xf32> -> vector<2x8xf32>
    %475 = arith.addf %461, %474 : vector<2x8xf32>
    %c127 = arith.constant 127 : index
    %c0_75 = arith.constant 0 : index
    %476 = vector.load %arg1[%c127, %c0_75] : memref<136x128xf32, #tpu.memory_space<vmem>>, vector<2x32xf32>
    %cst_76 = arith.constant dense<0.000000e+00> : vector<2x8xf32>
    %477 = tpu.matmul %476, %0, %cst_76 {dimension_numbers = #tpu.dot_dimension_numbers<[1], [0], [0], [1], [0, 0, 1, 1], [], []>} : vector<2x32xf32>, vector<32x8xf32>, vector<2x8xf32> -> vector<2x8xf32>
    %478 = arith.addf %475, %477 : vector<2x8xf32>
    %c129 = arith.constant 129 : index
    %c0_77 = arith.constant 0 : index
    %479 = vector.load %arg1[%c129, %c0_77] : memref<136x128xf32, #tpu.memory_space<vmem>>, vector<1x8xf32>
    %480 = vector.broadcast %479 : vector<1x8xf32> to vector<2x8xf32>
    %481 = arith.addf %478, %480 : vector<2x8xf32>
    %482 = arith.negf %481 : vector<2x8xf32>
    %483 = math.exp %482 : vector<2x8xf32>
    %cst_78 = arith.constant 1.000000e+00 : f32
    %484 = vector.broadcast %cst_78 : f32 to vector<2x8xf32>
    %485 = arith.addf %484, %483 : vector<2x8xf32>
    %486 = arith.divf %484, %485 : vector<2x8xf32>
    %c0_79 = arith.constant 0 : index
    %c0_80 = arith.constant 0 : index
    %487 = vector.load %arg2[%c0_79, %c0_80] : memref<2x8xf32, #tpu.memory_space<vmem>>, vector<2x8xf32>
    tpu.vector_store %arg2[%c0_79, %c0_80], %486 {strides = array<i32>} : memref<2x8xf32, #tpu.memory_space<vmem>>, vector<2x8xf32>,
    return
  }
}

</mosaic_0001>

<bundles_post_ra>
// kernel: lstnet_forward.1
= control target key start
LH: loop header
LB: loop body
LE: loop exit
PB: predicated region body
PF: predicated region fallthrough
CT: control target
= control target key end

     0   :  { %7 = vsyncpa [#allocation3], 0  ;;  %s3737_s0 = inlined_call_operand.vmem [shape: f32[32,8], index: 0, kind: input, shape index: {}]   ;;  %s3738_s1 = inlined_call_operand.hbm [shape: f32[136,128], index: 1, kind: input, shape index: {}]   ;;  %s3739_s2 = inlined_call_operand.hbm [shape: f32[2,8], index: 2, kind: output, shape index: {}]  }
   0x1   :  { %8 = vsyncpa [#allocation4], 0  ;;  %s3321_s9 = smov [#allocation2]   ;;  %s3273_s13 = scalar_lea.hbm %s3738_s1, 2176 }
   0x2   :  { %s16_s10 = sshll.u32 %s3321_s9, 4  ;;  %p3274_p0 = scmp.ne.s32.totalorder %s3738_s1, %s3273_s13  ;;  %s17_s10 = int_to_ptr.vmem [resolvable:$true] %s16_s10 }
   0x3   :  { %p3277_p1 = scmp.lt.u32.totalorder %s3273_s13, %s3738_s1 }
   0x5   :  { %p3279_p2 = pnand %p3277_p1, %p3274_p0 }
   0x7   :  { %3282 = shalt.err (!%p3279_p2)
}
   0x8   :  { %s3283_s18 = scalar_lea.vmem %s17_s10, 2176  ;;  %p3288_p4 = scmp.lt.s32.totalorder %s17_s10, %s17_s10 }
   0x9   :  { %p3284_p3 = scmp.ne.s32.totalorder %s17_s10, %s3283_s18  ;;  %p3289_p5 = scmp.lt.s32.totalorder %s3283_s18, %s3283_s18 }
   0xb   :  { %p3290_p6 = por %p3289_p5, %p3288_p4 }
   0xd   :  { %p3291_p7 = pnand %p3290_p6, %p3284_p3 }
   0xf   :  { %3294 = shalt.err (!%p3291_p7)
}
  0x10   :  { %s3322_s19 = smov 128   ;;  %s3323_s20 = smov 8  }
  0x11   :  { %22 = dma.hbm_to_vmem [thread:$0]  %s3738_s1, 2176, %s17_s10, [#allocation3], %s3322_s19, %s3322_s19, %s3323_s20  }
  0x12   :  { %3317 = dma.done.wait [#allocation3], 2176  }
  0x13   :  { %3318 = vsyncadd [#allocation3], 4294965120  ;;  %v31_v0 = vld [vmem:[#allocation2 + $0x8] sm:$0xff]  ;;  %v26_v1 = vld [vmem:[%s3737_s0] sm:$0xff]  ;;  %vm38_vm0 = vcmask 1046528   ;;  %vm46_vm1 = vcmask 64512   ;;  %v564_v51 = vlaneseq }
  0x14   :  { %v27_v2 = vld [vmem:[%s3737_s0 + $0x8] sm:$0xff]  ;;  %2900 = vmatprep.subr.mxu0 %v31_v0  ;;  %v39_v3 = vrot.slane %v26_v1, 1  ;;  %v28_v5 = vld [vmem:[%s3737_s0 + $0x10] sm:$0xff]  ;;  %v30_v6 = vld [vmem:[#allocation2] sm:$0xff]  ;;  %v234_v14 = vrot.slane %v26_v1, 2  ;;  %vm233_vm2 = vcmask 1045504  }
  0x15   :  { %v40_v4 = vrot.slane %v27_v2, 1  ;;  %v29_v7 = vld [vmem:[%s3737_s0 + $0x18] sm:$0xff]  ;;  %2901 = vmatpush3.msra.mxu0 %v31_v0  ;;  %v42_v8 = vrot.slane %v28_v5, 1  ;;  %v32_v13 = vld [vmem:[#allocation2 + $0x10] sm:$0xff]  ;;  %v235_v15 = vrot.slane %v27_v2, 2  ;;  %v237_v17 = vrot.slane %v28_v5, 2 }
  0x16   :  { %v44_v9 = vrot.slane %v29_v7, 1  ;;  %2908 = vmatprep.subr.mxu0 %v30_v6  ;;  %v33_v16 = vld [vmem:[#allocation2 + $0x18] sm:$0xff]  ;;  %v239_v19 = vrot.slane %v29_v7, 2  ;;  %v339_v22 = vrot.slane %v26_v1, 3  ;;  %v340_v23 = vrot.slane %v27_v2, 3  ;;  %v456_v29 = vld [vmem:[#allocation2 + $0x21] sm:$0xff] }
  0x17   :  { %v41_v10 = vsel %vm38_vm0, %v39_v3, %v40_v4  ;;  %v43_v11 = vsel %vm38_vm0, %v40_v4, %v42_v8  ;;  %v236_v18 = vsel %vm233_vm2, %v234_v14, %v235_v15  ;;  %v238_v20 = vsel %vm233_vm2, %v235_v15, %v237_v17  ;;  %v457_v30 = vld [vmem:[#allocation2 + $0x29] sm:$0xff]  ;;  %v2769_v33 = vld [vmem:[#allocation2 + $0x42] ss:$0 sm:$0xff]  ;;  %s3325_s30 = smov 32   ;;  %v2762_v34 = vld [vmem:[#allocation2 + $0x20] ss:$0 sm:$0xff] }
  0x18   :  { %2902 = vmatprep.mubr.msk.f32.mxu0 %vm46_vm1, %v41_v10  ;;  %v45_v12 = vsel %vm38_vm0, %v42_v8, %v44_v9  ;;  %v240_v21 = vsel %vm233_vm2, %v237_v17, %v239_v19  ;;  %vm338_vm3 = vcmask 1044480   ;;  %v342_v24 = vrot.slane %v28_v5, 3  ;;  %660 = vrot.lane.b32.xlu0 %v2769_v33, %s3325_s30  ;;  %v561_v39 = vld [vmem:[#allocation2 + $0x31] sm:$0xff]  ;;  %v562_v40 = vld [vmem:[#allocation2 + $0x39] sm:$0xff]  ;;  %v2763_v52 = vld [vmem:[#allocation2 + $0x41] ss:$0 sm:$0xff] }
  0x19   :  { %2903 = vmatmul.mubr.msk.f32.vlgmr.msra.gmra.mrb[0].mxu0 %vm46_vm1, %v43_v11  ;;  %v341_v25 = vsel %vm338_vm3, %v339_v22, %v340_v23  ;;  %v344_v26 = vrot.slane %v29_v7, 3  ;;  %v3086_v31 = vpack.c.bf16 %v457_v30, %v456_v29  ;;  %v3324_v32 = vmov 0.0|0.0   ;;  %s3328_s3 = smov 96   ;;  %s3329_s4 = smov 112  }
  0x1a   :  { %2909 = vmatpush3.msra.mxu0 %v30_v6  ;;  %2905 = vmatprep.mubr.msk.f32.mxu0 %vm46_vm1, %v45_v12  ;;  %v343_v27 = vsel %vm338_vm3, %v340_v23, %v342_v24  ;;  %vm463_vm4 = vcmask 130048   ;;  %v3408_v47 = vpack.c.bf16 %v562_v40, %v561_v39  ;;  %vm3326_vm5 = vmmov 0   ;;  %s3330_s5 = smov 16   ;;  %s3331_s6 = smov 120  }
  0x1b   :  { %2916 = vmatprep.subr.mxu0 %v32_v13  ;;  %v345_v28 = vsel %vm338_vm3, %v342_v24, %v344_v26  ;;  %3142 = vmatprep.subr.bf16.mxu1 %v3086_v31  ;;  %v3327_v49 = vmov 0.0   ;;  %v3434_v54 = vshrl.u32 %v564_v51, 7  ;;  %vm569_vm6 = vcmask 1040384   ;;  %s3332_s7 = smov 104  }
  0x1c   :  { %3143 = vmatpush3.bf16.msra.mxu1 %v3086_v31  ;;  %vm2067_vm8 = vcmask 1042432   ;;  %vm2642_vm10 = vcmask 261120   ;;  %vm2729_vm11 = vcmask 58368  }
  0x1d   :  { %2906 = vmatmul.mubr.msk.f32.gmra.mrb[2].mxu0 %vm46_vm1, %v44_v9  ;;  %3090 = vmatprep.subr.bf16.mxu1 %v3324_v32  ;;  %vm566_vm7 = vcmp.eq.s32.totalorder %v3434_v54, 0  ;;  %vm2059_vm9 = vcmp.lt.s32.totalorder %v3434_v54, 4 }
  0x1e   :  { %2910 = vmatprep.mubr.msk.f32.mxu0 %vm46_vm1, %v26_v1 }
  0x21   :  { %2911 = vmatmul.mubr.msk.f32.vlgmr.msra.gmra.mrb[0].mxu0 %vm46_vm1, %v27_v2 }
  0x22   :  { %2917 = vmatpush3.msra.mxu0 %v32_v13  ;;  %2913 = vmatprep.mubr.msk.f32.mxu0 %vm46_vm1, %v28_v5 }
  0x23   :  { %2924 = vmatprep.subr.mxu0 %v33_v16 }
  0x25   :  { %2914 = vmatmul.mubr.msk.f32.gmra.mrb[2].mxu0 %vm46_vm1, %v29_v7 }
  0x26   :  { %2918 = vmatprep.mubr.msk.f32.mxu0 %vm46_vm1, %v236_v18 }
  0x29   :  { %2919 = vmatmul.mubr.msk.f32.vlgmr.msra.gmra.mrb[0].mxu0 %vm46_vm1, %v238_v20 }
  0x2a   :  { %2925 = vmatpush3.msra.mxu0 %v33_v16  ;;  %2921 = vmatprep.mubr.msk.f32.mxu0 %vm46_vm1, %v240_v21 }
  0x2b   :  { %3087 = vmatprep.subr.bf16.mxu0 %v3086_v31 }
  0x2d   :  { %2922 = vmatmul.mubr.msk.f32.gmra.mrb[2].mxu0 %vm46_vm1, %v239_v19 }
  0x2e   :  { %2926 = vmatprep.mubr.msk.f32.mxu0 %vm46_vm1, %v341_v25 }
  0x31   :  { %2927 = vmatmul.mubr.msk.f32.vlgmr.msra.gmra.mrb[0].mxu0 %vm46_vm1, %v343_v27 }
  0x32   :  { %2929 = vmatprep.mubr.msk.f32.mxu0 %vm46_vm1, %v345_v28  ;;  %3089 = vmatpush3.bf16.msra.mxu0 %v3086_v31 }
  0x33   :  { %3108 = vmatprep.subr.bf16.mxu0 %v3324_v32 }
  0x35   :  { %2930 = vmatmul.mubr.msk.f32.gmra.mrb[2].mxu0 %vm46_vm1, %v344_v26 }
  0x8a   :  { %v3437_v5 = vpop.permute.xlu0 %660 }
 0x104   :  { %v2928_v35 = vpop.f32.mrb[0].mxu0 }
 0x105   :  { %v3395_v36 = vadd.f32 %v2928_v35, %v2762_v34  ;;  %v420_v37 = vpop.f32.mrb[1].mxu0 }
 0x106   :  { %v3397_v38 = vadd.f32 %v2762_v34, %v420_v37 }
 0x107   :  { %v453_v43 = vmax.f32 %v3395_v36, 0.0 }
 0x108   :  { %v452_v41 = vmax.f32 %v3397_v38, 0.0  ;;  %v2931_v42 = vpop.f32.mrb[2].mxu0 }
 0x109   :  { %v3401_v44 = vadd.f32 %v2931_v42, %v2762_v34  ;;  %v430_v45 = vpop.f32.mrb[3].mxu0 }
 0x10a   :  { %v3403_v46 = vadd.f32 %v2762_v34, %v430_v45  ;;  %2936 = vmatprep.mubr.msk.f32.mxu0 %vm463_vm4, %v452_v41 }
 0x10b   :  { %2937 = vmatmul.mubr.msk.f32.vlgmr.msra.gmra.mrb[4].mxu0 %vm463_vm4, %v453_v43  ;;  %v455_v50 = vmax.f32 %v3401_v44, 0.0 }
 0x10c   :  { %v454_v48 = vmax.f32 %v3403_v46, 0.0  ;;  %3110 = vmatpush3.bf16.msra.mxu0 %v3408_v47  ;;  %2988 = vmatprep.mubr.msk.f32.mxu0 %vm3326_vm5, %v3327_v49 }
 0x10d   :  { %3114 = vmatprep.subr.bf16.mxu0 %v3324_v32 }
 0x10e   :  { %2939 = vmatprep.mubr.msk.f32.mxu1 %vm463_vm4, %v454_v48 }
 0x10f   :  { %2940 = vmatmul.mubr.msk.f32.vlgmr.msra.gmra.mrb[0].mxu1 %vm463_vm4, %v455_v50 }
 0x110   :  { %3092 = vmatpush3.bf16.msra.mxu1 %v3408_v47  ;;  %2946 = vmatprep.mubr.msk.f32.mxu1 %vm3326_vm5, %v3327_v49 }
 0x111   :  { %3093 = vmatprep.subr.bf16.mxu1 %v3324_v32 }
 0x113   :  { %2947 = vmatmul.mubr.f32.vlgmr.msra.gmra.mrb[2].mxu1 %v3327_v49 }
 0x114   :  { %3095 = vmatpush3.bf16.msra.mxu1 %v3408_v47  ;;  %2953 = vmatprep.mubr.msk.f32.mxu1 %vm3326_vm5, %v3327_v49 }
 0x115   :  { %3096 = vmatprep.subr.bf16.mxu1 %v3324_v32 }
 0x1de   :  { %v2938_v53 = vpop.f32.mrb[4].mxu0 }
 0x1df   :  { %v548_v55 = vadd.f32 %v2938_v53, %v2763_v52  ;;  %v542_v56 = vpop.f32.mrb[5].mxu0 }
 0x1e0   :  { %v543_v57 = vadd.f32 %v2763_v52, %v542_v56 }
 0x1e1   :  { %v570_v58 = vrot.slane %v548_v55, 7  ;;  %v1539_v61 = vrot.slane %v548_v55, 1  ;;  %v1644_v62 = vrot.slane %v548_v55, 2  ;;  %v1751_v35 = vrot.slane %v548_v55, 3 }
 0x1e2   :  { %v2941_v59 = vpop.f32.mrb[0].mxu1  ;;  %v684_v60 = vrot.slane %v543_v57, 1  ;;  %v789_v1 = vrot.slane %v543_v57, 2  ;;  %v896_v2 = vrot.slane %v543_v57, 3  ;;  %v1324_v3 = vrot.slane %v543_v57, 7 }
 0x1e3   :  { %v558_v63 = vadd.f32 %v2941_v59, %v2763_v52  ;;  %v552_v0 = vpop.f32.mrb[1].mxu1  ;;  %v1003_v6 = vrot.slane %v543_v57, 4  ;;  %v1110_v7 = vrot.slane %v543_v57, 5  ;;  %v1217_v8 = vrot.slane %v543_v57, 6 }
 0x1e4   :  { %v553_v4 = vadd.f32 %v2763_v52, %v552_v0  ;;  %v1325_v9 = vsel %vm569_vm6, %v1324_v3, %v570_v58  ;;  %v1858_v40 = vrot.slane %v548_v55, 4 }
 0x1e5   :  { %v1433_v10 = vrot.slane %v558_v63, 7  ;;  %v3442_v11 = vsel %vm566_vm7, %v1539_v61, %v558_v63  ;;  %v1646_v12 = vrot.slane %v558_v63, 1  ;;  %v1753_v39 = vrot.slane %v558_v63, 2 }
 0x1e6   :  { %v571_v13 = vrot.slane %v553_v4, 7  ;;  %v644_v14 = vpop.f32.mrb[2].mxu1  ;;  %v3446_v15 = vsel %vm566_vm7, %v684_v60, %v553_v4  ;;  %v791_v16 = vrot.slane %v553_v4, 1  ;;  %v898_v17 = vrot.slane %v553_v4, 2 }
 0x1e7   :  { %v663_v18 = vadd.f32 %v3437_v5, %v644_v14  ;;  %v2948_v19 = vpop.f32.mrb[3].mxu1  ;;  %v1005_v20 = vrot.slane %v553_v4, 3  ;;  %v1112_v21 = vrot.slane %v553_v4, 4  ;;  %v1219_v22 = vrot.slane %v553_v4, 5 }
 0x1e8   :  { %v572_v23 = vsel %vm569_vm6, %v570_v58, %v571_v13  ;;  %v3452_v24 = vsel %vm566_vm7, %v789_v1, %v791_v16  ;;  %v3456_v25 = vsel %vm566_vm7, %v896_v2, %v898_v17  ;;  %v1327_v26 = vrot.slane %v553_v4, 6 }
 0x1e9   :  { %v574_v27 = vsel %vm566_vm7, %v543_v57, %v572_v23  ;;  %665 = vrot.lane.b32.xlu0 %v663_v18, %s3328_s3  ;;  %v3463_v28 = vsel %vm566_vm7, %v1003_v6, %v1005_v20  ;;  %v3467_v29 = vsel %vm566_vm7, %v1110_v7, %v1112_v21  ;;  %v3471_v30 = vsel %vm566_vm7, %v1217_v8, %v1219_v22 }
 0x1ea   :  { %v3475_v31 = vsel %vm566_vm7, %v1325_v9, %v1327_v26  ;;  %v1434_v33 = vsel %vm569_vm6, %v571_v13, %v1433_v10  ;;  %v3480_v34 = vsel %vm566_vm7, %v1644_v62, %v1646_v12  ;;  %v1860_v42 = vrot.slane %v558_v63, 3 }
 0x1eb   :  { %v3484_v37 = vsel %vm566_vm7, %v548_v55, %v1434_v33  ;;  %v3488_v45 = vsel %vm566_vm7, %v1751_v35, %v1753_v39  ;;  %v648_v52 = vadd.f32 %v644_v14, %v574_v27 }
 0x1ec   :  { %v3492_v51 = vsel %vm566_vm7, %v1858_v40, %v1860_v42 }
 0x1ed   :  { %v2768_v53 = vmul.f32 -1.442695, %v648_v52 }
 0x1ef   :  { %3169 = vpow2.f32 %v2768_v53 }
 0x1f9   :  { %v3170_v56 = vpop.eup %3169 }
 0x1fa   :  { %v652_v57 = vadd.f32 1.0, %v3170_v56 }
 0x1fc   :  { %3171 = vrcp.f32 %v652_v57 }
 0x206   :  { %v3172_v58 = vpop.eup %3171 }
 0x207   :  { %v675_v63 = vsub.f32 1.0, %v3172_v58  ;;  %v681_v1 = vmul.f32 0.0, %v3172_v58 }
 0x25b   :  { %v666_v59 = vpop.permute.xlu0 %665 }
 0x25c   :  { %v668_v60 = vmul.f32 %v3172_v58, %v666_v59 }
 0x25e   :  { %670 = vrot.lane.b32.xlu1 %v668_v60, %s3325_s30 }
 0x2d0   :  { %v671_v55 = vpop.permute.xlu1 %670 }
 0x2d1   :  { %v673_v61 = vadd.f32 %v671_v55, %v574_v27 }
 0x2d3   :  { %3173 = vtanh.f32 %v673_v61 }
 0x2dd   :  { %v3174_v62 = vpop.eup %3173 }
 0x2de   :  { %677 = vrot.lane.b32.xlu1 %v3174_v62, %s3329_s4 }
 0x350   :  { %v678_v0 = vpop.permute.xlu1 %677 }
 0x351   :  { %v680_v2 = vmul.f32 %v678_v0, %v675_v63 }
 0x353   :  { %v682_v3 = vadd.f32 %v681_v1, %v680_v2 }
 0x355   :  { %688 = vrot.lane.b32.xlu0 %v682_v3, %s3329_s4 }
 0x3c7   :  { %v689_v4 = vpop.permute.xlu0 %688 }
 0x3c8   :  { %2954 = vmatmul.mubr.msk.f32.vlgmr.msra.gmra.mrb[4].mxu1 %vm463_vm4, %v689_v4 }
 0x3c9   :  { %3098 = vmatpush3.bf16.msra.mxu1 %v3408_v47  ;;  %2960 = vmatprep.mubr.msk.f32.mxu1 %vm3326_vm5, %v3327_v49 }
 0x3ca   :  { %3099 = vmatprep.subr.bf16.mxu1 %v3324_v32 }
 0x49b   :  { %v758_v6 = vpop.f32.mrb[4].mxu1 }
 0x49c   :  { %v769_v7 = vadd.f32 %v758_v6, %v3437_v5  ;;  %v2955_v8 = vpop.f32.mrb[5].mxu1  ;;  %v762_v9 = vadd.f32 %v758_v6, %v3446_v15 }
 0x49e   :  { %771 = vrot.lane.b32.xlu1 %v769_v7, %s3328_s3  ;;  %v2771_v10 = vmul.f32 -1.442695, %v762_v9 }
 0x4a0   :  { %3175 = vpow2.f32 %v2771_v10 }
 0x4aa   :  { %v3176_v12 = vpop.eup %3175 }
 0x4ab   :  { %v766_v13 = vadd.f32 1.0, %v3176_v12 }
 0x4ad   :  { %3177 = vrcp.f32 %v766_v13 }
 0x4b7   :  { %v3178_v14 = vpop.eup %3177 }
 0x4b8   :  { %v781_v21 = vsub.f32 1.0, %v3178_v14  ;;  %v787_v23 = vmul.f32 %v3178_v14, %v682_v3 }
 0x510   :  { %v772_v16 = vpop.permute.xlu1 %771 }
 0x511   :  { %v774_v17 = vmul.f32 %v3178_v14, %v772_v16 }
 0x513   :  { %776 = vrot.lane.b32.xlu0 %v774_v17, %s3325_s30 }
 0x585   :  { %v777_v18 = vpop.permute.xlu0 %776 }
 0x586   :  { %v779_v19 = vadd.f32 %v777_v18, %v3446_v15 }
 0x588   :  { %3179 = vtanh.f32 %v779_v19 }
 0x592   :  { %v3180_v20 = vpop.eup %3179 }
 0x593   :  { %783 = vrot.lane.b32.xlu1 %v3180_v20, %s3329_s4 }
 0x605   :  { %v784_v22 = vpop.permute.xlu1 %783 }
 0x606   :  { %v786_v26 = vmul.f32 %v784_v22, %v781_v21 }
 0x608   :  { %v788_v27 = vadd.f32 %v787_v23, %v786_v26 }
 0x60a   :  { %795 = vrot.lane.b32.xlu0 %v788_v27, %s3329_s4 }
 0x67c   :  { %v796_v33 = vpop.permute.xlu0 %795 }
 0x67d   :  { %2961 = vmatmul.mubr.msk.f32.vlgmr.msra.gmra.mrb[6].mxu1 %vm463_vm4, %v796_v33 }
 0x67e   :  { %3101 = vmatpush3.bf16.msra.mxu1 %v3408_v47  ;;  %2967 = vmatprep.mubr.msk.f32.mxu1 %vm3326_vm5, %v3327_v49 }
 0x67f   :  { %3102 = vmatprep.subr.bf16.mxu1 %v3324_v32 }
 0x750   :  { %v865_v15 = vpop.f32.mrb[6].mxu1 }
 0x751   :  { %v876_v35 = vadd.f32 %v865_v15, %v3437_v5  ;;  %v2962_v39 = vpop.f32.mrb[7].mxu1  ;;  %v869_v40 = vadd.f32 %v865_v15, %v3452_v24 }
 0x753   :  { %878 = vrot.lane.b32.xlu1 %v876_v35, %s3328_s3  ;;  %v2773_v42 = vmul.f32 -1.442695, %v869_v40 }
 0x755   :  { %3181 = vpow2.f32 %v2773_v42 }
 0x75f   :  { %v3182_v52 = vpop.eup %3181 }
 0x760   :  { %v873_v53 = vadd.f32 1.0, %v3182_v52 }
 0x762   :  { %3183 = vrcp.f32 %v873_v53 }
 0x76c   :  { %v3184_v56 = vpop.eup %3183 }
 0x76d   :  { %v888_v61 = vsub.f32 1.0, %v3184_v56  ;;  %v894_v63 = vmul.f32 %v3184_v56, %v788_v27 }
 0x7c5   :  { %v879_v57 = vpop.permute.xlu1 %878 }
 0x7c6   :  { %v881_v58 = vmul.f32 %v3184_v56, %v879_v57 }
 0x7c8   :  { %883 = vrot.lane.b32.xlu0 %v881_v58, %s3325_s30 }
 0x83a   :  { %v884_v59 = vpop.permute.xlu0 %883 }
 0x83b   :  { %v886_v60 = vadd.f32 %v884_v59, %v3452_v24 }
 0x83d   :  { %3185 = vtanh.f32 %v886_v60 }
 0x847   :  { %v3186_v55 = vpop.eup %3185 }
 0x848   :  { %890 = vrot.lane.b32.xlu1 %v3186_v55, %s3329_s4 }
 0x8ba   :  { %v891_v62 = vpop.permute.xlu1 %890 }
 0x8bb   :  { %v893_v0 = vmul.f32 %v891_v62, %v888_v61 }
 0x8bd   :  { %v895_v1 = vadd.f32 %v894_v63, %v893_v0 }
 0x8bf   :  { %902 = vrot.lane.b32.xlu0 %v895_v1, %s3329_s4 }
 0x931   :  { %v903_v2 = vpop.permute.xlu0 %902 }
 0x932   :  { %2968 = vmatmul.mubr.msk.f32.vlgmr.msra.gmra.mrb[8].mxu1 %vm463_vm4, %v903_v2 }
 0x933   :  { %3104 = vmatpush3.bf16.msra.mxu1 %v3408_v47  ;;  %2974 = vmatprep.mubr.msk.f32.mxu1 %vm3326_vm5, %v3327_v49 }
 0x934   :  { %3105 = vmatprep.subr.bf16.mxu1 %v3324_v32 }
 0xa05   :  { %v972_v24 = vpop.f32.mrb[8].mxu1 }
 0xa06   :  { %v983_v3 = vadd.f32 %v972_v24, %v3437_v5  ;;  %v2969_v4 = vpop.f32.mrb[9].mxu1  ;;  %v976_v6 = vadd.f32 %v972_v24, %v3456_v25 }
 0xa08   :  { %985 = vrot.lane.b32.xlu1 %v983_v3, %s3328_s3  ;;  %v2775_v7 = vmul.f32 -1.442695, %v976_v6 }
 0xa0a   :  { %3187 = vpow2.f32 %v2775_v7 }
 0xa14   :  { %v3188_v8 = vpop.eup %3187 }
 0xa15   :  { %v980_v9 = vadd.f32 1.0, %v3188_v8 }
 0xa17   :  { %3189 = vrcp.f32 %v980_v9 }
 0xa21   :  { %v3190_v10 = vpop.eup %3189 }
 0xa22   :  { %v995_v18 = vsub.f32 1.0, %v3190_v10  ;;  %v1001_v20 = vmul.f32 %v3190_v10, %v895_v1 }
 0xa7a   :  { %v986_v12 = vpop.permute.xlu1 %985 }
 0xa7b   :  { %v988_v13 = vmul.f32 %v3190_v10, %v986_v12 }
 0xa7d   :  { %990 = vrot.lane.b32.xlu0 %v988_v13, %s3325_s30 }
 0xaef   :  { %v991_v14 = vpop.permute.xlu0 %990 }
 0xaf0   :  { %v993_v16 = vadd.f32 %v991_v14, %v3456_v25 }
 0xaf2   :  { %3191 = vtanh.f32 %v993_v16 }
 0xafc   :  { %v3192_v17 = vpop.eup %3191 }
 0xafd   :  { %997 = vrot.lane.b32.xlu1 %v3192_v17, %s3329_s4 }
 0xb6f   :  { %v998_v19 = vpop.permute.xlu1 %997 }
 0xb70   :  { %v1000_v21 = vmul.f32 %v998_v19, %v995_v18 }
 0xb72   :  { %v1002_v22 = vadd.f32 %v1001_v20, %v1000_v21 }
 0xb74   :  { %1009 = vrot.lane.b32.xlu0 %v1002_v22, %s3329_s4 }
 0xbe6   :  { %v1010_v23 = vpop.permute.xlu0 %1009 }
 0xbe7   :  { %2975 = vmatmul.mubr.msk.f32.vlgmr.msra.gmra.mrb[10].mxu1 %vm463_vm4, %v1010_v23 }
 0xbe8   :  { %3107 = vmatpush3.bf16.msra.mxu1 %v3408_v47  ;;  %2981 = vmatprep.mubr.msk.f32.mxu1 %vm3326_vm5, %v3327_v49 }
 0xbe9   :  { %3111 = vmatprep.subr.bf16.mxu1 %v3324_v32 }
 0xcba   :  { %v1079_v25 = vpop.f32.mrb[10].mxu1 }
 0xcbb   :  { %v1090_v26 = vadd.f32 %v1079_v25, %v3437_v5  ;;  %v2976_v27 = vpop.f32.mrb[11].mxu1  ;;  %v1083_v33 = vadd.f32 %v1079_v25, %v3463_v28 }
 0xcbd   :  { %1092 = vrot.lane.b32.xlu1 %v1090_v26, %s3328_s3  ;;  %v2777_v15 = vmul.f32 -1.442695, %v1083_v33 }
 0xcbf   :  { %3193 = vpow2.f32 %v2777_v15 }
 0xcc9   :  { %v3194_v35 = vpop.eup %3193 }
 0xcca   :  { %v1087_v39 = vadd.f32 1.0, %v3194_v35 }
 0xccc   :  { %3195 = vrcp.f32 %v1087_v39 }
 0xcd6   :  { %v3196_v40 = vpop.eup %3195 }
 0xcd7   :  { %v1102_v58 = vsub.f32 1.0, %v3196_v40  ;;  %v1108_v60 = vmul.f32 %v3196_v40, %v1002_v22 }
 0xd2f   :  { %v1093_v42 = vpop.permute.xlu1 %1092 }
 0xd30   :  { %v1095_v52 = vmul.f32 %v3196_v40, %v1093_v42 }
 0xd32   :  { %1097 = vrot.lane.b32.xlu0 %v1095_v52, %s3325_s30 }
 0xda4   :  { %v1098_v53 = vpop.permute.xlu0 %1097 }
 0xda5   :  { %v1100_v56 = vadd.f32 %v1098_v53, %v3463_v28 }
 0xda7   :  { %3197 = vtanh.f32 %v1100_v56 }
 0xdb1   :  { %v3198_v57 = vpop.eup %3197 }
 0xdb2   :  { %1104 = vrot.lane.b32.xlu1 %v3198_v57, %s3329_s4 }
 0xe24   :  { %v1105_v59 = vpop.permute.xlu1 %1104 }
 0xe25   :  { %v1107_v55 = vmul.f32 %v1105_v59, %v1102_v58 }
 0xe27   :  { %v1109_v61 = vadd.f32 %v1108_v60, %v1107_v55 }
 0xe29   :  { %1116 = vrot.lane.b32.xlu0 %v1109_v61, %s3329_s4 }
 0xe9b   :  { %v1117_v62 = vpop.permute.xlu0 %1116 }
 0xe9c   :  { %2982 = vmatmul.mubr.msk.f32.vlgmr.msra.gmra.mrb[12].mxu1 %vm463_vm4, %v1117_v62 }
 0xe9d   :  { %3113 = vmatpush3.bf16.msra.mxu1 %v3408_v47  ;;  %2995 = vmatprep.mubr.msk.f32.mxu1 %vm3326_vm5, %v3327_v49 }
 0xe9e   :  { %3117 = vmatprep.subr.bf16.mxu1 %v3324_v32 }
 0xf6f   :  { %v1186_v28 = vpop.f32.mrb[12].mxu1 }
 0xf70   :  { %v1197_v63 = vadd.f32 %v1186_v28, %v3437_v5  ;;  %v2983_v0 = vpop.f32.mrb[13].mxu1  ;;  %v1190_v1 = vadd.f32 %v1186_v28, %v3467_v29 }
 0xf72   :  { %1199 = vrot.lane.b32.xlu1 %v1197_v63, %s3328_s3  ;;  %v2779_v2 = vmul.f32 -1.442695, %v1190_v1 }
 0xf74   :  { %3199 = vpow2.f32 %v2779_v2 }
 0xf7e   :  { %v3200_v24 = vpop.eup %3199 }
 0xf7f   :  { %v1194_v3 = vadd.f32 1.0, %v3200_v24 }
 0xf81   :  { %3201 = vrcp.f32 %v1194_v3 }
 0xf8b   :  { %v3202_v4 = vpop.eup %3201 }
 0xf8c   :  { %v1209_v12 = vsub.f32 1.0, %v3202_v4  ;;  %v1215_v14 = vmul.f32 %v3202_v4, %v1109_v61 }
 0xfe4   :  { %v1200_v6 = vpop.permute.xlu1 %1199 }
 0xfe5   :  { %v1202_v7 = vmul.f32 %v3202_v4, %v1200_v6 }
 0xfe7   :  { %1204 = vrot.lane.b32.xlu0 %v1202_v7, %s3325_s30 }
0x1059   :  { %v1205_v8 = vpop.permute.xlu0 %1204 }
0x105a   :  { %v1207_v9 = vadd.f32 %v1205_v8, %v3467_v29 }
0x105c   :  { %3203 = vtanh.f32 %v1207_v9 }
0x1066   :  { %v3204_v10 = vpop.eup %3203 }
0x1067   :  { %1211 = vrot.lane.b32.xlu1 %v3204_v10, %s3329_s4 }
0x10d9   :  { %v1212_v13 = vpop.permute.xlu1 %1211 }
0x10da   :  { %v1214_v16 = vmul.f32 %v1212_v13, %v1209_v12 }
0x10dc   :  { %v1216_v17 = vadd.f32 %v1215_v14, %v1214_v16 }
0x10de   :  { %1223 = vrot.lane.b32.xlu0 %v1216_v17, %s3329_s4 }
0x1150   :  { %v1224_v18 = vpop.permute.xlu0 %1223 }
0x1151   :  { %2989 = vmatmul.mubr.msk.f32.vlgmr.msra.gmra.mrb[6].mxu0 %vm463_vm4, %v1224_v18 }
0x1152   :  { %3116 = vmatpush3.bf16.msra.mxu0 %v3408_v47  ;;  %3002 = vmatprep.mubr.msk.f32.mxu0 %vm3326_vm5, %v3327_v49 }
0x1153   :  { %3120 = vmatprep.subr.bf16.mxu0 %v3324_v32 }
0x1224   :  { %v1293_v29 = vpop.f32.mrb[6].mxu0 }
0x1225   :  { %v1304_v19 = vadd.f32 %v1293_v29, %v3437_v5  ;;  %v2990_v20 = vpop.f32.mrb[7].mxu0  ;;  %v1297_v21 = vadd.f32 %v1293_v29, %v3471_v30 }
0x1227   :  { %1306 = vrot.lane.b32.xlu1 %v1304_v19, %s3328_s3  ;;  %v2781_v22 = vmul.f32 -1.442695, %v1297_v21 }
0x1229   :  { %3205 = vpow2.f32 %v2781_v22 }
0x1233   :  { %v3206_v23 = vpop.eup %3205 }
0x1234   :  { %v1301_v25 = vadd.f32 1.0, %v3206_v23 }
0x1236   :  { %3207 = vrcp.f32 %v1301_v25 }
0x1240   :  { %v3208_v26 = vpop.eup %3207 }
0x1241   :  { %v1316_v40 = vsub.f32 1.0, %v3208_v26  ;;  %v1322_v52 = vmul.f32 %v3208_v26, %v1216_v17 }
0x1299   :  { %v1307_v27 = vpop.permute.xlu1 %1306 }
0x129a   :  { %v1309_v33 = vmul.f32 %v3208_v26, %v1307_v27 }
0x129c   :  { %1311 = vrot.lane.b32.xlu0 %v1309_v33, %s3325_s30 }
0x130e   :  { %v1312_v15 = vpop.permute.xlu0 %1311 }
0x130f   :  { %v1314_v35 = vadd.f32 %v1312_v15, %v3471_v30 }
0x1311   :  { %3209 = vtanh.f32 %v1314_v35 }
0x131b   :  { %v3210_v39 = vpop.eup %3209 }
0x131c   :  { %1318 = vrot.lane.b32.xlu1 %v3210_v39, %s3329_s4 }
0x138e   :  { %v1319_v42 = vpop.permute.xlu1 %1318 }
0x138f   :  { %v1321_v53 = vmul.f32 %v1319_v42, %v1316_v40 }
0x1391   :  { %v1323_v56 = vadd.f32 %v1322_v52, %v1321_v53 }
0x1393   :  { %1331 = vrot.lane.b32.xlu0 %v1323_v56, %s3329_s4 }
0x1405   :  { %v1332_v57 = vpop.permute.xlu0 %1331 }
0x1406   :  { %2996 = vmatmul.mubr.msk.f32.vlgmr.msra.gmra.mrb[14].mxu1 %vm463_vm4, %v1332_v57 }
0x1407   :  { %3119 = vmatpush3.bf16.msra.mxu1 %v3408_v47  ;;  %3009 = vmatprep.mubr.msk.f32.mxu1 %vm3326_vm5, %v3327_v49 }
0x1408   :  { %3123 = vmatprep.subr.bf16.mxu1 %v3324_v32 }
0x14d9   :  { %v1401_v30 = vpop.f32.mrb[14].mxu1 }
0x14da   :  { %v1412_v58 = vadd.f32 %v1401_v30, %v3437_v5  ;;  %v2997_v59 = vpop.f32.mrb[15].mxu1  ;;  %v1405_v60 = vadd.f32 %v1401_v30, %v3475_v31 }
0x14dc   :  { %1414 = vrot.lane.b32.xlu1 %v1412_v58, %s3328_s3  ;;  %v2783_v55 = vmul.f32 -1.442695, %v1405_v60 }
0x14de   :  { %3211 = vpow2.f32 %v2783_v55 }
0x14e8   :  { %v3212_v61 = vpop.eup %3211 }
0x14e9   :  { %v1409_v62 = vadd.f32 1.0, %v3212_v61 }
0x14eb   :  { %3213 = vrcp.f32 %v1409_v62 }
0x14f5   :  { %v3214_v28 = vpop.eup %3213 }
0x14f6   :  { %v1424_v3 = vsub.f32 1.0, %v3214_v28  ;;  %v1430_v6 = vmul.f32 %v3214_v28, %v1323_v56 }
0x154e   :  { %v1415_v63 = vpop.permute.xlu1 %1414 }
0x154f   :  { %v1417_v0 = vmul.f32 %v3214_v28, %v1415_v63 }
0x1551   :  { %1419 = vrot.lane.b32.xlu0 %v1417_v0, %s3325_s30 }
0x15c3   :  { %v1420_v1 = vpop.permute.xlu0 %1419 }
0x15c4   :  { %v1422_v2 = vadd.f32 %v1420_v1, %v3475_v31 }
0x15c6   :  { %3215 = vtanh.f32 %v1422_v2 }
0x15d0   :  { %v3216_v24 = vpop.eup %3215 }
0x15d1   :  { %1426 = vrot.lane.b32.xlu1 %v3216_v24, %s3329_s4 }
0x1643   :  { %v1427_v4 = vpop.permute.xlu1 %1426 }
0x1644   :  { %v1429_v7 = vmul.f32 %v1427_v4, %v1424_v3 }
0x1646   :  { %v1431_v8 = vadd.f32 %v1430_v6, %v1429_v7 }
0x1648   :  { %1438 = vrot.lane.b32.xlu0 %v1431_v8, %s3329_s4 }
0x16ba   :  { %v1439_v9 = vpop.permute.xlu0 %1438 }
0x16bb   :  { %3003 = vmatmul.mubr.msk.f32.vlgmr.msra.gmra.mrb[8].mxu0 %vm463_vm4, %v1439_v9 }
0x16bc   :  { %3122 = vmatpush3.bf16.msra.mxu0 %v3408_v47  ;;  %3016 = vmatprep.mubr.msk.f32.mxu0 %vm3326_vm5, %v3327_v49 }
0x16bd   :  { %3126 = vmatprep.subr.bf16.mxu0 %v3324_v32 }
0x178e   :  { %v1508_v31 = vpop.f32.mrb[8].mxu0 }
0x178f   :  { %v1519_v10 = vadd.f32 %v1508_v31, %v3437_v5  ;;  %v3004_v12 = vpop.f32.mrb[9].mxu0  ;;  %v1512_v13 = vadd.f32 %v1508_v31, %v3484_v37 }
0x1790   :  { %v1965_v12 = vld [vmem:[#allocation2 + $0x43] sm:$0xff] }
0x1791   :  { %1521 = vrot.lane.b32.xlu1 %v1519_v10, %s3328_s3  ;;  %v2785_v14 = vmul.f32 -1.442695, %v1512_v13  ;;  %v1966_v13 = vld [vmem:[#allocation2 + $0x4b] sm:$0xff] }
0x1793   :  { %3217 = vpow2.f32 %v2785_v14  ;;  %v3129_v14 = vpack.c.bf16 %v1966_v13, %v1965_v12 }
0x179d   :  { %v3218_v16 = vpop.eup %3217 }
0x179e   :  { %v1516_v17 = vadd.f32 1.0, %v3218_v16 }
0x17a0   :  { %3219 = vrcp.f32 %v1516_v17 }
0x17aa   :  { %v3220_v18 = vpop.eup %3219 }
0x17ab   :  { %v1531_v23 = vsub.f32 1.0, %v3220_v18  ;;  %v1537_v26 = vmul.f32 %v3220_v18, %v1431_v8 }
0x1803   :  { %v1522_v29 = vpop.permute.xlu1 %1521 }
0x1804   :  { %v1524_v19 = vmul.f32 %v3220_v18, %v1522_v29 }
0x1806   :  { %1526 = vrot.lane.b32.xlu0 %v1524_v19, %s3325_s30 }
0x1878   :  { %v1527_v20 = vpop.permute.xlu0 %1526 }
0x1879   :  { %v1529_v21 = vadd.f32 %v1527_v20, %v3484_v37 }
0x187b   :  { %3221 = vtanh.f32 %v1529_v21  ;;  %v2794_v21 = vld [vmem:[#allocation2 + $0x5b] ss:$0 sm:$0xff] }
0x1885   :  { %v3222_v22 = vpop.eup %3221 }
0x1886   :  { %1533 = vrot.lane.b32.xlu1 %v3222_v22, %s3329_s4 }
0x18f8   :  { %v1534_v25 = vpop.permute.xlu1 %1533 }
0x18f9   :  { %v1536_v27 = vmul.f32 %v1534_v25, %v1531_v23 }
0x18fb   :  { %v1538_v33 = vadd.f32 %v1537_v26, %v1536_v27 }
0x18fd   :  { %1543 = vrot.lane.b32.xlu0 %v1538_v33, %s3329_s4 }
0x196f   :  { %v1544_v15 = vpop.permute.xlu0 %1543 }
0x1970   :  { %3010 = vmatmul.mubr.msk.f32.vlgmr.msra.gmra.mrb[16].mxu1 %vm463_vm4, %v1544_v15 }
0x1971   :  { %3125 = vmatpush3.bf16.msra.mxu1 %v3408_v47  ;;  %3023 = vmatprep.mubr.msk.f32.mxu1 %vm3326_vm5, %v3327_v49 }
0x1972   :  { %3130 = vmatprep.subr.bf16.mxu1 %v3129_v14 }
0x1a43   :  { %v1613_v37 = vpop.f32.mrb[16].mxu1 }
0x1a44   :  { %v1624_v35 = vadd.f32 %v1613_v37, %v3437_v5  ;;  %v3011_v39 = vpop.f32.mrb[17].mxu1  ;;  %v1617_v40 = vadd.f32 %v1613_v37, %v3442_v11 }
0x1a46   :  { %1626 = vrot.lane.b32.xlu1 %v1624_v35, %s3328_s3  ;;  %v2787_v42 = vmul.f32 -1.442695, %v1617_v40 }
0x1a48   :  { %3223 = vpow2.f32 %v2787_v42 }
0x1a52   :  { %v3224_v52 = vpop.eup %3223 }
0x1a53   :  { %v1621_v53 = vadd.f32 1.0, %v3224_v52 }
0x1a55   :  { %3225 = vrcp.f32 %v1621_v53 }
0x1a5f   :  { %v3226_v56 = vpop.eup %3225 }
0x1a60   :  { %v1636_v55 = vsub.f32 1.0, %v3226_v56  ;;  %v1642_v62 = vmul.f32 %v3226_v56, %v1538_v33 }
0x1ab8   :  { %v1627_v57 = vpop.permute.xlu1 %1626 }
0x1ab9   :  { %v1629_v30 = vmul.f32 %v3226_v56, %v1627_v57 }
0x1abb   :  { %1631 = vrot.lane.b32.xlu0 %v1629_v30, %s3325_s30 }
0x1b2d   :  { %v1632_v58 = vpop.permute.xlu0 %1631 }
0x1b2e   :  { %v1634_v59 = vadd.f32 %v1632_v58, %v3442_v11 }
0x1b30   :  { %3227 = vtanh.f32 %v1634_v59 }
0x1b3a   :  { %v3228_v60 = vpop.eup %3227 }
0x1b3b   :  { %1638 = vrot.lane.b32.xlu1 %v3228_v60, %s3329_s4 }
0x1bad   :  { %v1639_v61 = vpop.permute.xlu1 %1638 }
0x1bae   :  { %v1641_v28 = vmul.f32 %v1639_v61, %v1636_v55 }
0x1bb0   :  { %v1643_v63 = vadd.f32 %v1642_v62, %v1641_v28 }
0x1bb2   :  { %1650 = vrot.lane.b32.xlu0 %v1643_v63, %s3329_s4 }
0x1c24   :  { %v1651_v0 = vpop.permute.xlu0 %1650 }
0x1c25   :  { %3017 = vmatmul.mubr.msk.f32.vlgmr.msra.gmra.mrb[10].mxu0 %vm463_vm4, %v1651_v0 }
0x1c26   :  { %3128 = vmatpush3.bf16.msra.mxu0 %v3408_v47  ;;  %3030 = vmatprep.mubr.msk.f32.mxu0 %vm3326_vm5, %v3327_v49 }
0x1c27   :  { %3043 = vmatprep.subr.mxu0 %v3327_v49 }
0x1cf8   :  { %v1720_v11 = vpop.f32.mrb[10].mxu0 }
0x1cf9   :  { %v1731_v1 = vadd.f32 %v1720_v11, %v3437_v5  ;;  %v3018_v2 = vpop.f32.mrb[11].mxu0  ;;  %v1724_v24 = vadd.f32 %v1720_v11, %v3480_v34 }
0x1cfa   :  { %v2057_v2 = vld [vmem:[#allocation2 + $0x53] sm:$0xff] }
0x1cfb   :  { %1733 = vrot.lane.b32.xlu1 %v1731_v1, %s3328_s3  ;;  %v2789_v3 = vmul.f32 -1.442695, %v1724_v24  ;;  %v2800_v24 = vld [vmem:[#allocation2 + $0x5c] ss:$0 sm:$0xff] }
0x1cfd   :  { %3229 = vpow2.f32 %v2789_v3 }
0x1d07   :  { %v3230_v4 = vpop.eup %3229 }
0x1d08   :  { %v1728_v6 = vadd.f32 1.0, %v3230_v4 }
0x1d0a   :  { %3231 = vrcp.f32 %v1728_v6 }
0x1d14   :  { %v3232_v7 = vpop.eup %3231 }
0x1d15   :  { %v1743_v16 = vsub.f32 1.0, %v3232_v7  ;;  %v1749_v18 = vmul.f32 %v3232_v7, %v1643_v63 }
0x1d6d   :  { %v1734_v47 = vpop.permute.xlu1 %1733 }
0x1d6e   :  { %v1736_v8 = vmul.f32 %v3232_v7, %v1734_v47 }
0x1d70   :  { %1738 = vrot.lane.b32.xlu0 %v1736_v8, %s3325_s30 }
0x1de2   :  { %v1739_v9 = vpop.permute.xlu0 %1738 }
0x1de3   :  { %v1741_v31 = vadd.f32 %v1739_v9, %v3480_v34 }
0x1de5   :  { %3233 = vtanh.f32 %v1741_v31 }
0x1def   :  { %v3234_v10 = vpop.eup %3233 }
0x1df0   :  { %1745 = vrot.lane.b32.xlu1 %v3234_v10, %s3329_s4 }
0x1e62   :  { %v1746_v17 = vpop.permute.xlu1 %1745 }
0x1e63   :  { %v1748_v29 = vmul.f32 %v1746_v17, %v1743_v16 }
0x1e65   :  { %v3615_v19 = vadd.f32 %v1749_v18, %v1748_v29 }
0x1e67   :  { %1757 = vrot.lane.b32.xlu0 %v3615_v19, %s3329_s4 }
0x1ed9   :  { %v1758_v20 = vpop.permute.xlu0 %1757 }
0x1eda   :  { %3024 = vmatmul.mubr.msk.f32.vlgmr.msra.gmra.mrb[18].mxu1 %vm463_vm4, %v1758_v20 }
0x1edb   :  { %3132 = vmatpush3.bf16.msra.mxu1 %v3129_v14  ;;  %3037 = vmatprep.mubr.msk.f32.mxu1 %vm463_vm4, %v452_v41 }
0x1edc   :  { %3053 = vmatprep.subr.mxu1 %v3327_v49 }
0x1ede   :  { %3038 = vmatmul.mubr.msk.f32.vlgmr.msra.gmra.mrb[20].mxu1 %vm463_vm4, %v453_v43 }
0x1edf   :  { %3040 = vmatprep.mubr.msk.f32.mxu1 %vm463_vm4, %v454_v48  ;;  %3054 = vmatpush3.msra.mxu1 %v2057_v2 }
0x1ee0   :  { %3063 = vmatprep.subr.mxu1 %v3327_v49 }
0x1ee2   :  { %3041 = vmatmul.mubr.msk.f32.gmra.mrb[22].mxu1 %vm463_vm4, %v455_v50 }
0x1ee3   :  { %3055 = vmatprep.mubr.msk.f32.mxu1 %vm3326_vm5, %v3327_v49 }
0x1fad   :  { %v1827_v38 = vpop.f32.mrb[18].mxu1 }
0x1fae   :  { %v1838_v41 = vadd.f32 %v1827_v38, %v3437_v5  ;;  %v3025_v34 = vpop.f32.mrb[19].mxu1  ;;  %v1831_v60 = vadd.f32 %v1827_v38, %v3488_v45 }
0x1fb0   :  { %1840 = vrot.lane.b32.xlu1 %v1838_v41, %s3328_s3  ;;  %v2791_v55 = vmul.f32 -1.442695, %v1831_v60 }
0x1fb1   :  { %v3039_v36 = vpop.f32.mrb[20].mxu1 }
0x1fb2   :  { %v2044_v43 = vadd.f32 %v3039_v36, %v2794_v21  ;;  %v2038_v22 = vpop.f32.mrb[21].mxu1  ;;  %3235 = vpow2.f32 %v2791_v55 }
0x1fb3   :  { %v2039_v46 = vadd.f32 %v2794_v21, %v2038_v22 }
0x1fb4   :  { %v2063_v23 = vrot.slane %v2044_v43, 1  ;;  %v2068_v48 = vrot.slane %v2044_v43, 5 }
0x1fb5   :  { %v2062_v44 = vrot.slane %v2039_v46, 1  ;;  %v2180_v25 = vrot.slane %v2039_v46, 5  ;;  %v3042_v50 = vpop.f32.mrb[22].mxu1 }
0x1fb6   :  { %v2054_v26 = vadd.f32 %v3042_v50, %v2794_v21  ;;  %v2048_v27 = vpop.f32.mrb[23].mxu1 }
0x1fb7   :  { %v2049_v33 = vadd.f32 %v2794_v21, %v2048_v27  ;;  %v2064_v15 = vsel %vm38_vm0, %v2062_v44, %v2063_v23  ;;  %v2181_v37 = vsel %vm2067_vm8, %v2180_v25, %v2068_v48 }
0x1fb8   :  { %v2185_v35 = vrot.slane %v2054_v26, 1  ;;  %v2293_v39 = vrot.slane %v2054_v26, 5 }
0x1fb9   :  { %v2069_v40 = vrot.slane %v2049_v33, 5  ;;  %v2184_v42 = vrot.slane %v2049_v33, 1 }
0x1fbb   :  { %v2070_v52 = vsel %vm2067_vm8, %v2068_v48, %v2069_v40  ;;  %v2186_v53 = vsel %vm38_vm0, %v2184_v42, %v2185_v35  ;;  %v2291_v56 = vsel %vm38_vm0, %v2063_v23, %v2184_v42  ;;  %v2294_v57 = vsel %vm2067_vm8, %v2069_v40, %v2293_v39 }
0x1fbc   :  { %v2072_v30 = vsel %vm2059_vm9, %v2064_v15, %v2070_v52  ;;  %v3644_v58 = vsel %vm2059_vm9, %v2181_v37, %v2186_v53  ;;  %v3646_v59 = vsel %vm2059_vm9, %v2291_v56, %v2294_v57  ;;  %v3236_v61 = vpop.eup %3235 }
0x1fbd   :  { %v1835_v62 = vadd.f32 1.0, %v3236_v61 }
0x1fbf   :  { %3237 = vrcp.f32 %v1835_v62 }
0x1fc9   :  { %v3238_v54 = vpop.eup %3237 }
0x1fca   :  { %v1850_v3 = vsub.f32 1.0, %v3238_v54  ;;  %v1856_v6 = vmul.f32 %v3238_v54, %v3615_v19 }
0x2022   :  { %v1841_v28 = vpop.permute.xlu1 %1840 }
0x2023   :  { %v1843_v63 = vmul.f32 %v3238_v54, %v1841_v28 }
0x2025   :  { %1845 = vrot.lane.b32.xlu0 %v1843_v63, %s3325_s30 }
0x2097   :  { %v1846_v0 = vpop.permute.xlu0 %1845 }
0x2098   :  { %v1848_v11 = vadd.f32 %v1846_v0, %v3488_v45 }
0x209a   :  { %3239 = vtanh.f32 %v1848_v11 }
0x20a4   :  { %v3240_v1 = vpop.eup %3239 }
0x20a5   :  { %1852 = vrot.lane.b32.xlu1 %v3240_v1, %s3329_s4 }
0x20a9   :  { %2157 = vrot.lane.b32.xlu1 %v2800_v24, %s3330_s5 }
0x2117   :  { %v1853_v4 = vpop.permute.xlu1 %1852 }
0x2118   :  { %v1855_v7 = vmul.f32 %v1853_v4, %v1850_v3  ;;  %v2401_v3 = vld [vmem:[#allocation2 + $0x6d] sm:$0xff] }
0x211a   :  { %v3655_v47 = vadd.f32 %v1856_v6, %v1855_v7 }
0x211b   :  { %v2158_v31 = vpop.permute.xlu1 %2157 }
0x211c   :  { %1864 = vrot.lane.b32.xlu0 %v3655_v47, %s3329_s4 }
0x218e   :  { %v1865_v45 = vpop.permute.xlu0 %1864 }
0x218f   :  { %3031 = vmatmul.mubr.msk.f32.vlgmr.msra.gmra.mrb[12].mxu0 %vm463_vm4, %v1865_v45 }
0x2190   :  { %3044 = vmatpush3.msra.mxu0 %v2057_v2  ;;  %3045 = vmatprep.mubr.msk.f32.mxu0 %vm3326_vm5, %v3327_v49 }
0x2191   :  { %3048 = vmatprep.subr.mxu0 %v3327_v49 }
0x2193   :  { %3046 = vmatmul.mubr.f32.vlgmr.msra.gmra.mrb[14].mxu0 %v3327_v49 }
0x2194   :  { %3049 = vmatpush3.msra.mxu0 %v2057_v2  ;;  %3050 = vmatprep.mubr.msk.f32.mxu0 %vm3326_vm5, %v3327_v49 }
0x2195   :  { %3058 = vmatprep.subr.mxu0 %v3327_v49 }
0x2262   :  { %v3667_v8 = vpop.f32.mrb[12].mxu0 }
0x2263   :  { %v3032_v9 = vpop.f32.mrb[13].mxu0  ;;  %v1945_v6 = vadd.f32 %v3667_v8, %v3437_v5  ;;  %v1938_v7 = vadd.f32 %v3667_v8, %v3492_v51 }
0x2265   :  { %v2793_v45 = vmul.f32 -1.442695, %v1938_v7 }
0x2266   :  { %v2141_v10 = vpop.f32.mrb[14].mxu0 }
0x2267   :  { %v2160_v12 = vadd.f32 %v2158_v31, %v2141_v10  ;;  %v3047_v13 = vpop.f32.mrb[15].mxu0  ;;  %v2145_v14 = vadd.f32 %v2141_v10, %v2072_v30 }
0x2269   :  { %2162 = vrot.lane.b32.xlu0 %v2160_v12, %s3329_s4  ;;  %v2799_v16 = vmul.f32 -1.442695, %v2145_v14 }
0x226b   :  { %3241 = vpow2.f32 %v2799_v16 }
0x2275   :  { %v3242_v17 = vpop.eup %3241 }
0x2276   :  { %v2149_v18 = vadd.f32 1.0, %v3242_v17 }
0x2278   :  { %3243 = vrcp.f32 %v2149_v18 }
0x2282   :  { %v3244_v29 = vpop.eup %3243 }
0x2283   :  { %v2172_v21 = vsub.f32 1.0, %v3244_v29  ;;  %v2178_v43 = vmul.f32 0.0, %v3244_v29 }
0x22db   :  { %v2163_v19 = vpop.permute.xlu0 %2162 }
0x22dc   :  { %v2165_v20 = vmul.f32 %v3244_v29, %v2163_v19 }
0x22de   :  { %2167 = vrot.lane.b32.xlu1 %v2165_v20, %s3330_s5  ;;  %v2399_v20 = vld [vmem:[#allocation2 + $0x5d] sm:$0xff] }
0x2350   :  { %v2168_v38 = vpop.permute.xlu1 %2167 }
0x2351   :  { %v2170_v41 = vadd.f32 %v2168_v38, %v2072_v30  ;;  %v2400_v38 = vld [vmem:[#allocation2 + $0x65] sm:$0xff] }
0x2353   :  { %3245 = vtanh.f32 %v2170_v41  ;;  %v3134_v41 = vpack.c.bf16 %v2400_v38, %v2399_v20 }
0x235d   :  { %v3246_v34 = vpop.eup %3245 }
0x235e   :  { %2174 = vrot.lane.b32.xlu0 %v3246_v34, %s3331_s6 }
0x23d0   :  { %v2175_v36 = vpop.permute.xlu0 %2174 }
0x23d1   :  { %v2177_v22 = vmul.f32 %v2175_v36, %v2172_v21  ;;  %v2477_v21 = vld [vmem:[#allocation2 + $0x75] sm:$0xff] }
0x23d3   :  { %v2179_v46 = vadd.f32 %v2178_v43, %v2177_v22 }
0x23d5   :  { %2190 = vrot.lane.b32.xlu1 %v2179_v46, %s3331_s6 }
0x2447   :  { %v2191_v23 = vpop.permute.xlu1 %2190 }
0x2448   :  { %3051 = vmatmul.mubr.msk.f32.vlgmr.msra.gmra.mrb[16].mxu0 %vm46_vm1, %v2191_v23 }
0x2449   :  { %3060 = vmatprep.mubr.msk.f32.mxu0 %vm3326_vm5, %v3327_v49  ;;  %3059 = vmatpush3.msra.mxu0 %v2401_v3 }
0x244a   :  { %3133 = vmatprep.subr.bf16.mxu0 %v3324_v32 }
0x251b   :  { %v2260_v48 = vpop.f32.mrb[16].mxu0 }
0x251c   :  { %v2271_v44 = vadd.f32 %v2260_v48, %v2158_v31  ;;  %v3052_v25 = vpop.f32.mrb[17].mxu0  ;;  %v2264_v50 = vadd.f32 %v2260_v48, %v3644_v58 }
0x251e   :  { %2273 = vrot.lane.b32.xlu0 %v2271_v44, %s3329_s4  ;;  %v2802_v26 = vmul.f32 -1.442695, %v2264_v50 }
0x2520   :  { %3247 = vpow2.f32 %v2802_v26 }
0x252a   :  { %v3248_v27 = vpop.eup %3247 }
0x252b   :  { %v2268_v33 = vadd.f32 1.0, %v3248_v27 }
0x252d   :  { %3249 = vrcp.f32 %v2268_v33 }
0x2537   :  { %v3250_v15 = vpop.eup %3249 }
0x2538   :  { %v2283_v52 = vsub.f32 1.0, %v3250_v15  ;;  %v2289_v56 = vmul.f32 %v3250_v15, %v2179_v46 }
0x2590   :  { %v2274_v37 = vpop.permute.xlu0 %2273 }
0x2591   :  { %v2276_v35 = vmul.f32 %v3250_v15, %v2274_v37  ;;  %v2492_v37 = vld [vmem:[#allocation2 + $0x7d] sm:$0x3] }
0x2593   :  { %2278 = vrot.lane.b32.xlu1 %v2276_v35, %s3330_s5  ;;  %v3270_v35 = vld [vmem:[%s3737_s0 + $0x8] sm:$0xff] }
0x2605   :  { %v2279_v39 = vpop.permute.xlu1 %2278 }
0x2606   :  { %v2281_v40 = vadd.f32 %v2279_v39, %v3644_v58 }
0x2608   :  { %3251 = vtanh.f32 %v2281_v40  ;;  %v3271_v40 = vld [vmem:[%s3737_s0 + $0x10] sm:$0xff] }
0x2612   :  { %v3252_v42 = vpop.eup %3251 }
0x2613   :  { %2285 = vrot.lane.b32.xlu0 %v3252_v42, %s3331_s6  ;;  %v3272_v42 = vld [vmem:[%s3737_s0 + $0x18] sm:$0xff] }
0x2685   :  { %v2286_v53 = vpop.permute.xlu0 %2285 }
0x2686   :  { %v2288_v57 = vmul.f32 %v2286_v53, %v2283_v52  ;;  %v3140_v52 = vpack.c.bf16 %v3272_v42, %v3271_v40  ;;  %v2641_v53 = vld [vmem:[#allocation2 + $0x7f] sm:$0x3] }
0x2688   :  { %v2290_v30 = vadd.f32 %v2289_v56, %v2288_v57 }
0x268a   :  { %2298 = vrot.lane.b32.xlu1 %v2290_v30, %s3331_s6 }
0x26fc   :  { %v2299_v60 = vpop.permute.xlu1 %2298 }
0x26fd   :  { %3056 = vmatmul.mubr.msk.f32.vlgmr.msra.gmra.mrb[24].mxu1 %vm46_vm1, %v2299_v60 }
0x26fe   :  { %3065 = vmatprep.mubr.msk.f32.mxu1 %vm3326_vm5, %v3327_v49 }
0x27d0   :  { %v2368_v55 = vpop.f32.mrb[24].mxu1 }
0x27d1   :  { %v2379_v61 = vadd.f32 %v2368_v55, %v2158_v31  ;;  %v3057_v58 = vpop.f32.mrb[25].mxu1  ;;  %v2372_v62 = vadd.f32 %v2368_v55, %v3646_v59 }
0x27d2   :  { %v2809_v58 = vld [vmem:[#allocation2 + $0x81] ss:$0 sm:$0xff] }
0x27d3   :  { %2381 = vrot.lane.b32.xlu0 %v2379_v61, %s3329_s4  ;;  %v2804_v54 = vmul.f32 -1.442695, %v2372_v62 }
0x27d5   :  { %3253 = vpow2.f32 %v2804_v54 }
0x27df   :  { %v3254_v28 = vpop.eup %3253 }
0x27e0   :  { %v2376_v63 = vadd.f32 1.0, %v3254_v28 }
0x27e2   :  { %3255 = vrcp.f32 %v2376_v63 }
0x27ec   :  { %v3256_v0 = vpop.eup %3255 }
0x27ed   :  { %v2391_v31 = vsub.f32 1.0, %v3256_v0  ;;  %v2397_v12 = vmul.f32 %v3256_v0, %v2290_v30 }
0x2845   :  { %v2382_v11 = vpop.permute.xlu0 %2381 }
0x2846   :  { %v2384_v1 = vmul.f32 %v3256_v0, %v2382_v11 }
0x2848   :  { %2386 = vrot.lane.b32.xlu1 %v2384_v1, %s3330_s5 }
0x28ba   :  { %v2387_v2 = vpop.permute.xlu1 %2386 }
0x28bb   :  { %v2389_v24 = vadd.f32 %v2387_v2, %v3646_v59 }
0x28bd   :  { %3257 = vtanh.f32 %v2389_v24 }
0x28be   :  { %3259 = vpow2.f32 %v2793_v45 }
0x28c7   :  { %v3258_v4 = vpop.eup %3257 }
0x28c8   :  { %2393 = vrot.lane.b32.xlu0 %v3258_v4, %s3331_s6  ;;  %v3260_v9 = vpop.eup %3259 }
0x28c9   :  { %v1942_v59 = vadd.f32 1.0, %v3260_v9 }
0x28cb   :  { %3261 = vrcp.f32 %v1942_v59 }
0x28cc   :  { %1947 = vrot.lane.b32.xlu0 %v1945_v6, %s3328_s3 }
0x28d5   :  { %v3262_v17 = vpop.eup %3261 }
0x28d6   :  { %v1957_v36 = vsub.f32 1.0, %v3262_v17  ;;  %v1963_v48 = vmul.f32 %v3262_v17, %v3655_v47  ;;  %v3269_v47 = vld [vmem:[%s3737_s0] sm:$0xff]  ;;  %s3333_s0 = smov [#allocation5]  }
0x28d7   :  { %v3137_v39 = vpack.c.bf16 %v3270_v35, %v3269_v47  ;;  %s2737_s16 = sshll.u32 %s3333_s0, 4  ;;  %s2738_s16 = int_to_ptr.vmem [resolvable:$true] %s2737_s16 }
0x28d8   :  { %s3295_s17 = scalar_lea.vmem %s2738_s16, 32  ;;  %p3300_p9 = scmp.lt.s32.totalorder %s2738_s16, %s2738_s16 }
0x28d9   :  { %p3296_p8 = scmp.ne.s32.totalorder %s2738_s16, %s3295_s17  ;;  %p3301_p10 = scmp.lt.s32.totalorder %s3295_s17, %s3295_s17 }
0x28db   :  { %p3302_p11 = por %p3301_p10, %p3300_p9 }
0x28dd   :  { %p3303_p12 = pnand %p3302_p11, %p3296_p8 }
0x293a   :  { %v2394_v10 = vpop.permute.xlu0 %2393 }
0x293b   :  { %v2396_v13 = vmul.f32 %v2394_v10, %v2391_v31 }
0x293d   :  { %v2398_v14 = vadd.f32 %v2397_v12, %v2396_v13 }
0x293e   :  { %v1948_v16 = vpop.permute.xlu0 %1947 }
0x293f   :  { %2403 = vrot.lane.b32.xlu1 %v2398_v14, %s3331_s6  ;;  %v1950_v5 = vmul.f32 %v3262_v17, %v1948_v16 }
0x2943   :  { %1952 = vrot.lane.b32.xlu1 %v1950_v5, %s3325_s30 }
0x29b1   :  { %v2404_v18 = vpop.permute.xlu1 %2403 }
0x29b2   :  { %3061 = vmatmul.mubr.msk.f32.vlgmr.msra.gmra.mrb[18].mxu0 %vm46_vm1, %v2404_v18 }
0x29b3   :  { %3072 = vmatprep.mubr.msk.f32.mxu0 %vm3326_vm5, %v3327_v49  ;;  %3135 = vmatpush3.bf16.msra.mxu0 %v3134_v41 }
0x29b5   :  { %v1953_v8 = vpop.permute.xlu1 %1952 }
0x29b6   :  { %v1955_v29 = vadd.f32 %v1953_v8, %v3492_v51 }
0x29b8   :  { %3263 = vtanh.f32 %v1955_v29 }
0x29c2   :  { %v3264_v19 = vpop.eup %3263 }
0x29c3   :  { %1959 = vrot.lane.b32.xlu0 %v3264_v19, %s3329_s4 }
0x2a35   :  { %v1960_v34 = vpop.permute.xlu0 %1959 }
0x2a36   :  { %v1962_v22 = vmul.f32 %v1960_v34, %v1957_v36 }
0x2a38   :  { %v1964_v51 = vadd.f32 %v1963_v48, %v1962_v22 }
0x2a85   :  { %v2473_v43 = vpop.f32.mrb[18].mxu0 }
0x2a86   :  { %v2478_v46 = vmul.f32 %v2477_v21, %v2473_v43  ;;  %v3062_v23 = vpop.f32.mrb[19].mxu0 }
0x2a88   :  { %2484 = vrot.lane.b32.xlu0 %v2478_v46, %s3329_s4  ;;  %2480 = vrot.lane.b32.xlu1 %v2478_v46, %s3331_s6 }
0x2a8c   :  { %2567 = vrot.lane.b32.xlu0 %v1964_v51, %s3329_s4  ;;  %2488 = vrot.lane.b32.xlu1 %v2478_v46, %s3332_s7 }
0x2afa   :  { %v2485_v44 = vpop.permute.xlu0 %2484  ;;  %v2481_v25 = vpop.permute.xlu1 %2480 }
0x2afb   :  { %v2483_v50 = vadd.f32 %v2481_v25, %v2478_v46 }
0x2afd   :  { %v2487_v26 = vadd.f32 %v2485_v44, %v2483_v50 }
0x2afe   :  { %v2568_v27 = vpop.permute.xlu0 %2567  ;;  %v2489_v33 = vpop.permute.xlu1 %2488 }
0x2aff   :  { %v2491_v15 = vadd.f32 %v2489_v33, %v2487_v26  ;;  %3073 = vmatmul.mubr.msk.f32.vlgmr.msra.gmra.mrb[20].mxu0 %vm463_vm4, %v2568_v27 }
0x2b01   :  { %3064 = vmatpush3.msra.mxu1 %v2491_v15 }
0x2b02   :  { %3066 = vmatmul.mubr.msk.f32.vlgmr.msra.gmra.mrb[26].mxu1 %vm46_vm1, %v2492_v37  ;;  %3136 = vmatprep.subr.bf16.mxu1 %v3324_v32 }
0x2b03   :  { %3138 = vmatpush3.bf16.msra.mxu1 %v3137_v39  ;;  %3083 = vmatprep.mubr.msk.f32.mxu1 %vm3326_vm5, %v3327_v49 }
0x2b04   :  { %3139 = vmatprep.subr.bf16.mxu1 %v3324_v32 }
0x2b07   :  { %3141 = vmatpush3.bf16.msra.mxu1 %v3140_v52 }
0x2b0a   :  { %3084 = vmatmul.mubr.msk.f32.vlgmr.msra.gmra.mrb[28].mxu1 %vm2642_vm10, %v2641_v53 }
0x2bd2   :  { %v2637_v56 = vpop.f32.mrb[20].mxu0 }
0x2bd3   :  { %v3074_v57 = vpop.f32.mrb[21].mxu0 }
0x2bd5   :  { %v2562_v30 = vpop.f32.mrb[26].mxu1 }
0x2bd6   :  { %v2638_v60 = vadd.f32 %v2637_v56, %v2562_v30  ;;  %v3067_v55 = vpop.f32.mrb[27].mxu1 }
0x2bdd   :  { %v2712_v61 = vpop.f32.mrb[28].mxu1 }
0x2bde   :  { %v2716_v62 = vadd.f32 %v2712_v61, %v2638_v60  ;;  %v3085_v54 = vpop.f32.mrb[29].mxu1 }
0x2be0   :  { %v2722_v28 = vadd.f32 %v2809_v58, %v2716_v62 }
0x2be2   :  { %v2810_v63 = vmul.f32 -1.442695, %v2722_v28 }
0x2be4   :  { %3265 = vpow2.f32 %v2810_v63 }
0x2bee   :  { %v3266_v0 = vpop.eup %3265 }
0x2bef   :  { %v2726_v49 = vadd.f32 1.0, %v3266_v0 }
0x2bf1   :  { %3267 = vrcp.f32 %v2726_v49 }
0x2bfb   :  { %v3268_v32 = vpop.eup %3267 }
0x2bfc   :  { %2730 = vst.msk [vmem:[#allocation5] sm:$0x3] %vm2729_vm11, %v3268_v32 }
0x2bfd   :  { %3306 = shalt.err (!%p3303_p12)
}
0x2bfe   :  { %s3307_s20 = scalar_lea.hbm %s3739_s2, 32 }
0x2bff   :  { %p3308_p13 = scmp.ne.s32.totalorder %s3739_s2, %s3307_s20  ;;  %p3311_p0 = scmp.lt.u32.totalorder %s3307_s20, %s3739_s2 }
0x2c01   :  { %p3313_p1 = pnand %p3311_p0, %p3308_p13 }
0x2c03   :  { %3316 = shalt.err (!%p3313_p1)
}
0x2c04   :  { %2740 = dma.vmem_to_hbm [thread:$0]  %s2738_s16, 32, %s3739_s2, [#allocation4]  }
0x2c05   :  { %3319 = dma.done.wait [#allocation4], 32  }
0x2c06   :  { %3320 = vsyncadd [#allocation4], 4294967264 }
0x2c07   :  { %2744 = vsyncpa [#allocation3], 1 }
0x2c08   :  { %2745 = vsyncpa [#allocation4], 1 }

</bundles_post_ra>
